<compile_context>
chip_gen: v7x
topology: tpu7x:2x2x1
jax: 0.10.0
libtpu: 0.0.40
codegen_flags: <defaults>
</compile_context>

<pallas_src>
import functools
import numpy as np

import jax
import jax.numpy as jnp
from jax.experimental import pallas as pl
from jax.experimental.pallas import tpu as pltpu


_KPAD = 128   # padded rfft-bin count (lane aligned)
_MPAD = 128   # padded mel-bin count  (lane aligned)


# ----------------------------------------------------------------------------
# Parameter construction (deterministic, pure numpy) --------------------------
# ----------------------------------------------------------------------------
def _hz_to_mel(f):
    f = np.asarray(f, dtype=np.float64)
    f_sp = 200.0 / 3
    mels = f / f_sp
    min_log_hz = 1000.0
    min_log_mel = min_log_hz / f_sp
    logstep = np.log(6.4) / 27.0
    return np.where(f >= min_log_hz,
                    min_log_mel + np.log(np.maximum(f, 1e-10) / min_log_hz) / logstep,
                    mels)


def _mel_to_hz(m):
    m = np.asarray(m, dtype=np.float64)
    f_sp = 200.0 / 3
    freqs = f_sp * m
    min_log_hz = 1000.0
    min_log_mel = min_log_hz / f_sp
    logstep = np.log(6.4) / 27.0
    return np.where(m >= min_log_mel,
                    min_log_hz * np.exp(logstep * (m - min_log_mel)),
                    freqs)


def _mel_filterbank(sr, n_fft, n_mels, fmin=0.0, fmax=None):
    """librosa.filters.mel (htk=False, norm='slaney') re-implemented in numpy."""
    if fmax is None:
        fmax = sr / 2.0
    n_freq = n_fft // 2 + 1
    fftfreqs = np.linspace(0.0, sr / 2.0, n_freq)
    mel_pts = np.linspace(_hz_to_mel(fmin), _hz_to_mel(fmax), n_mels + 2)
    mel_f = _mel_to_hz(mel_pts)
    fdiff = np.diff(mel_f)
    ramps = mel_f[:, None] - fftfreqs[None, :]
    weights = np.zeros((n_mels, n_freq), dtype=np.float64)
    for i in range(n_mels):
        lower = -ramps[i] / fdiff[i]
        upper = ramps[i + 2] / fdiff[i + 1]
        weights[i] = np.maximum(0.0, np.minimum(lower, upper))
    enorm = 2.0 / (mel_f[2:n_mels + 2] - mel_f[:n_mels])
    weights *= enorm[:, None]
    return weights.astype(np.float32)  # [n_mels, n_freq]


def _hann_window(n):
    # torch.hann_window default (periodic=True)
    k = np.arange(n, dtype=np.float64)
    return 0.5 * (1.0 - np.cos(2.0 * np.pi * k / n))


def _fused_dft_matrix(n_fft):
    """Fused windowed real-DFT weight [W, 2*KPAD].

    Columns [0:K]          -> windowed cos (Re part)
    Columns [KPAD:KPAD+K]  -> -windowed sin (Im part)
    Remaining columns are zero (lane padding).
    """
    K = n_fft // 2 + 1
    win = _hann_window(n_fft)
    n = np.arange(n_fft, dtype=np.float64)[:, None]
    k = np.arange(K, dtype=np.float64)[None, :]
    ang = 2.0 * np.pi * n * k / n_fft
    cs = np.zeros((n_fft, 2 * _KPAD), dtype=np.float32)
    cs[:, :K] = (np.cos(ang) * win[:, None]).astype(np.float32)
    cs[:, _KPAD:_KPAD + K] = (-np.sin(ang) * win[:, None]).astype(np.float32)
    return cs


def _padded_mel_matrix(sr, n_fft, n_mels, fmin, fmax):
    """Zero-padded mel projection [KPAD, MPAD] (acts on DFT magnitudes)."""
    K = n_fft // 2 + 1
    m = _mel_filterbank(sr, n_fft, n_mels, fmin, fmax)  # [M, K]
    out = np.zeros((_KPAD, _MPAD), dtype=np.float32)
    out[:K, :n_mels] = m.T
    return out


def _frame_signal(x, n_fft, hop):
    """torch.stft framing with center=True, pad_mode='reflect'.  x: [N, T]."""
    pad = n_fft // 2
    xp = jnp.pad(x, ((0, 0), (pad, pad)), mode="reflect")
    T = x.shape[1]
    n_frames = T // hop + 1
    idx = hop * np.arange(n_frames)[:, None] + np.arange(n_fft)[None, :]
    return xp[:, idx]  # [N, F, W]


def _round_up(x, m):
    return -(-x // m) * m


# ----------------------------------------------------------------------------
# Pallas kernel ---------------------------------------------------------------
# ----------------------------------------------------------------------------
def _mel_l1_kernel(x_ref, cs_ref, mel_ref, mag_out, log_out, *,
                   half_rows, kpad, clamp_eps, power):
    # x_ref: (2*HR, W)  -- first HR rows are est frames, last HR are ref frames
    x = x_ref[...]

    # Single fused windowed-DFT matmul: Re in lanes [0:kpad), Im in [kpad:2*kpad)
    dft = jnp.dot(x, cs_ref[...], preferred_element_type=jnp.float32)
    re = dft[:, :kpad]
    im = dft[:, kpad:]

    # Tiny clamp inside the sqrt keeps the gradient finite at zero magnitude
    # (forward deviation <= 1e-15, well within tolerance).
    mag = jnp.sqrt(jnp.maximum(re * re + im * im, 1e-30))      # (2*HR, kpad)

    mel = jnp.dot(mag, mel_ref[...], preferred_element_type=jnp.float32)  # (2*HR, MPAD)

    est_mel = mel[:half_rows]
    ref_mel = mel[half_rows:]

    # log10(clamp(x, eps) ** power) == (power/ln10) * ln(max(x, eps))
    c = np.float32(power / np.log(10.0))
    log_est = c * jnp.log(jnp.maximum(est_mel, clamp_eps))
    log_ref = c * jnp.log(jnp.maximum(ref_mel, clamp_eps))

    d_mag = jnp.abs(est_mel - ref_mel)            # (HR, MPAD), padded lanes == 0
    d_log = jnp.abs(log_est - log_ref)

    # Sublane-grouped partial reduce to an (8, 128) block (pure VPU adds);
    # the final cross-lane reduction happens once, in plain JAX.
    mpad = d_mag.shape[-1]
    mag_out[0] = jnp.sum(d_mag.reshape(half_rows // 8, 8, mpad), axis=0)
    log_out[0] = jnp.sum(d_log.reshape(half_rows // 8, 8, mpad), axis=0)


def _mel_l1_sums(est_frames, ref_frames, cs_mat, mel_mat, clamp_eps, power,
                 *, max_half_rows=512):
    """L1 sums (mag, log-mag) over all frames.  est/ref_frames: [R, W] f32."""
    R, W = est_frames.shape
    HR = min(max_half_rows, _round_up(R, 8))      # est (and ref) rows per tile
    Rpad = _round_up(R, HR)
    ntiles = Rpad // HR
    TR = 2 * HR                                   # rows per grid step (est + ref)

    pad = Rpad - R
    e = jnp.pad(est_frames, ((0, pad), (0, 0)))
    r = jnp.pad(ref_frames, ((0, pad), (0, 0)))
    # Interleave est/ref at tile granularity so each grid step gets HR est rows
    # followed by HR ref rows -> one stacked matmul stream per step.
    x = jnp.concatenate(
        [e.reshape(ntiles, HR, W), r.reshape(ntiles, HR, W)], axis=1
    ).reshape(ntiles * TR, W)

    kernel = functools.partial(
        _mel_l1_kernel, half_rows=HR, kpad=_KPAD,
        clamp_eps=np.float32(clamp_eps), power=np.float32(power))

    flops = 2 * ntiles * TR * W * (2 * _KPAD) + 2 * ntiles * TR * _KPAD * _MPAD
    transc = ntiles * TR * (_KPAD + _MPAD)
    bytes_acc = 4 * (ntiles * TR * W + W * 2 * _KPAD + _KPAD * _MPAD
                     + 2 * ntiles * 8 * _MPAD)

    mag_part, log_part = pl.pallas_call(
        kernel,
        out_shape=(jax.ShapeDtypeStruct((ntiles, 8, _MPAD), jnp.float32),
                   jax.ShapeDtypeStruct((ntiles, 8, _MPAD), jnp.float32)),
        grid=(ntiles,),
        in_specs=[
            pl.BlockSpec((TR, W), lambda i: (i, 0)),
            pl.BlockSpec((W, 2 * _KPAD), lambda i: (0, 0)),
            pl.BlockSpec((_KPAD, _MPAD), lambda i: (0, 0)),
        ],
        out_specs=(pl.BlockSpec((1, 8, _MPAD), lambda i: (i, 0, 0)),
                   pl.BlockSpec((1, 8, _MPAD), lambda i: (i, 0, 0))),
        compiler_params=pltpu.CompilerParams(
            dimension_semantics=("parallel",)),   # per-tile outputs -> megacore OK
        cost_estimate=pl.CostEstimate(flops=flops, transcendentals=transc,
                                      bytes_accessed=bytes_acc),
    )(x, cs_mat, mel_mat)

    return jnp.sum(mag_part), jnp.sum(log_part)


# ----------------------------------------------------------------------------
# Full module forward ---------------------------------------------------------
# ----------------------------------------------------------------------------
@functools.partial(
    jax.jit,
    static_argnames=("sr", "n_mels", "mel_fmin", "mel_fmax", "window_lengths",
                     "clamp_eps", "mag_weight", "log_weight", "power"))
def mel_spectrogram_loss(est, ref, *,
                         sr=16000,
                         n_mels=(16, 8),
                         mel_fmin=(0.0, 0.0),
                         mel_fmax=(None, None),
                         window_lengths=(128, 64),
                         clamp_eps=1e-5,
                         mag_weight=1.0,
                         log_weight=1.0,
                         power=2.0):
    assert est.shape == ref.shape and est.ndim == 3
    B, C, T = est.shape
    N = B * C
    est2 = est.reshape(-1, T).astype(jnp.float32)
    ref2 = ref.reshape(-1, T).astype(jnp.float32)

    loss = jnp.float32(0.0)
    for nm, fmin, fmax, w in zip(n_mels, mel_fmin, mel_fmax, window_lengths):
        assert T > w // 2, "reflect padding requires T > window_length // 2"
        hop = w // 4
        cs_mat = jnp.asarray(_fused_dft_matrix(w))                    # [W, 256]
        mel_mat = jnp.asarray(_padded_mel_matrix(sr, w, nm, fmin, fmax))  # [128, 128]

        # TODO(synk): frame inside the kernel from the reflect-padded raw
        # signal (pl.ds over time) to avoid the 4x framed-array HBM expansion.
        F = T // hop + 1
        est_f = _frame_signal(est2, w, hop).reshape(-1, w)            # [N*F, W]
        ref_f = _frame_signal(ref2, w, hop).reshape(-1, w)

        mag_sum, log_sum = _mel_l1_sums(est_f, ref_f, cs_mat, mel_mat,
                                        clamp_eps, power)

        n_elems = N * F * nm                      # L1Loss 'mean' element count
        loss = loss + log_weight * (log_sum / n_elems) \
                    + mag_weight * (mag_sum / n_elems)
    return loss


# Pure-JAX reference for correctness checking ---------------------------------
def _reference_loss(est, ref, **kw):
    sr = kw["sr"]; clamp_eps = kw["clamp_eps"]; power = kw["power"]
    B, C, T = est.shape
    est2 = est.reshape(-1, T).astype(jnp.float32)
    ref2 = ref.reshape(-1, T).astype(jnp.float32)
    loss = 0.0
    for nm, fmin, fmax, w in zip(kw["n_mels"], kw["mel_fmin"], kw["mel_fmax"],
                                 kw["window_lengths"]):
        hop = w // 4
        K = w // 2 + 1
        cs = _fused_dft_matrix(w)
        cos_mat = cs[:, :K]
        sin_mat = cs[:, _KPAD:_KPAD + K]
        mel_t = _mel_filterbank(sr, w, nm, fmin, fmax).T
        def melspec(x):
            fr = _frame_signal(x, w, hop)
            re = fr @ cos_mat
            im = fr @ sin_mat
            return jnp.sqrt(re * re + im * im) @ mel_t
        em, rm = melspec(est2), melspec(ref2)
        lg = lambda x: jnp.log10(jnp.maximum(x, clamp_eps) ** power)
        loss += kw["log_weight"] * jnp.mean(jnp.abs(lg(em) - lg(rm)))
        loss += kw["mag_weight"] * jnp.mean(jnp.abs(em - rm))
    return loss


if __name__ == "__main__":
    cfg = dict(sr=16000, n_mels=(16, 8), mel_fmin=(0.0, 0.0),
               mel_fmax=(None, None), window_lengths=(128, 64),
               clamp_eps=1e-5, mag_weight=1.0, log_weight=1.0, power=2.0)

    key = jax.random.PRNGKey(0)
    k1, k2 = jax.random.split(key)
    B, C, T = 2, 1, 512
    est = jax.random.normal(k1, (B, C, T), dtype=jnp.float32)
    ref = jax.random.normal(k2, (B, C, T), dtype=jnp.float32)

    loss = mel_spectrogram_loss(est, ref, **cfg)
    loss = jax.block_until_ready(loss)

    loss_ref = jax.block_until_ready(_reference_loss(est, ref, **cfg))
    np.testing.assert_allclose(np.asarray(loss), np.asarray(loss_ref),
                               rtol=5e-3, atol=5e-3)

    print("KERNEL_OK")
</pallas_src>

<mosaic_0001>
module attributes {stable_mosaic.version = 11 : i64} {
  func.func @_mel_l1_kernel(%arg0: i32, %arg1: memref<80x128xf32, #tpu.memory_space<vmem>>, %arg2: memref<128x256xf32, #tpu.memory_space<vmem>>, %arg3: memref<128x128xf32, #tpu.memory_space<vmem>>, %arg4: memref<1x8x128xf32, #tpu.memory_space<vmem>>, %arg5: memref<1x8x128xf32, #tpu.memory_space<vmem>>) attributes {dimension_semantics = [#tpu.dimension_semantics<parallel>], iteration_bounds = array<i64: 1>, scalar_prefetch = 0 : i64, scratch_operands = 0 : i64, tpu.core_type = #tpu.core_type<tc>, window_params = [{transform_indices = @transform_0, window_bounds = array<i64: 80, 128>}, {pipeline_mode = #tpu.pipeline_mode<synchronous>, transform_indices = @transform_1, window_bounds = array<i64: 128, 256>}, {pipeline_mode = #tpu.pipeline_mode<synchronous>, transform_indices = @transform_2, window_bounds = array<i64: 128, 128>}, {transform_indices = @transform_3, window_bounds = array<i64: 1, 8, 128>}, {transform_indices = @transform_4, window_bounds = array<i64: 1, 8, 128>}]} {
    %c0 = arith.constant 0 : index
    %c0_0 = arith.constant 0 : index
    %0 = vector.load %arg1[%c0, %c0_0] : memref<80x128xf32, #tpu.memory_space<vmem>>, vector<80x128xf32>
    %c0_1 = arith.constant 0 : index
    %c0_2 = arith.constant 0 : index
    %1 = vector.load %arg2[%c0_1, %c0_2] : memref<128x256xf32, #tpu.memory_space<vmem>>, vector<128x256xf32>
    %cst = arith.constant dense<0.000000e+00> : vector<80x256xf32>
    %2 = tpu.matmul %0, %1, %cst {dimension_numbers = #tpu.dot_dimension_numbers<[1], [0], [0], [1], [0, 0, 1, 1], [], []>} : vector<80x128xf32>, vector<128x256xf32>, vector<80x256xf32> -> vector<80x256xf32>
    %3 = vector.extract_strided_slice %2 {offsets = [0, 0], sizes = [80, 128], strides = [1, 1]} : vector<80x256xf32> to vector<80x128xf32>
    %4 = vector.extract_strided_slice %2 {offsets = [0, 128], sizes = [80, 128], strides = [1, 1]} : vector<80x256xf32> to vector<80x128xf32>
    %5 = arith.mulf %3, %3 : vector<80x128xf32>
    %6 = arith.mulf %4, %4 : vector<80x128xf32>
    %7 = arith.addf %5, %6 : vector<80x128xf32>
    %cst_3 = arith.constant 1.000000e-30 : f32
    %8 = vector.broadcast %cst_3 : f32 to vector<80x128xf32>
    %9 = arith.maximumf %7, %8 : vector<80x128xf32>
    %10 = math.sqrt %9 : vector<80x128xf32>
    %c0_4 = arith.constant 0 : index
    %c0_5 = arith.constant 0 : index
    %11 = vector.load %arg3[%c0_4, %c0_5] : memref<128x128xf32, #tpu.memory_space<vmem>>, vector<128x128xf32>
    %cst_6 = arith.constant dense<0.000000e+00> : vector<80x128xf32>
    %12 = tpu.matmul %10, %11, %cst_6 {dimension_numbers = #tpu.dot_dimension_numbers<[1], [0], [0], [1], [0, 0, 1, 1], [], []>} : vector<80x128xf32>, vector<128x128xf32>, vector<80x128xf32> -> vector<80x128xf32>
    %13 = vector.extract_strided_slice %12 {offsets = [0, 0], sizes = [40, 128], strides = [1, 1]} : vector<80x128xf32> to vector<40x128xf32>
    %14 = vector.extract_strided_slice %12 {offsets = [40, 0], sizes = [40, 128], strides = [1, 1]} : vector<80x128xf32> to vector<40x128xf32>
    %cst_7 = arith.constant 9.99999974E-6 : f32
    %15 = vector.broadcast %cst_7 : f32 to vector<40x128xf32>
    %16 = arith.maximumf %13, %15 : vector<40x128xf32>
    %17 = math.log %16 : vector<40x128xf32>
    %cst_8 = arith.constant 0.868588984 : f32
    %18 = vector.broadcast %cst_8 : f32 to vector<40x128xf32>
    %19 = arith.mulf %18, %17 : vector<40x128xf32>
    %cst_9 = arith.constant 9.99999974E-6 : f32
    %20 = vector.broadcast %cst_9 : f32 to vector<40x128xf32>
    %21 = arith.maximumf %14, %20 : vector<40x128xf32>
    %22 = math.log %21 : vector<40x128xf32>
    %cst_10 = arith.constant 0.868588984 : f32
    %23 = vector.broadcast %cst_10 : f32 to vector<40x128xf32>
    %24 = arith.mulf %23, %22 : vector<40x128xf32>
    %25 = arith.subf %13, %14 : vector<40x128xf32>
    %26 = math.absf %25 : vector<40x128xf32>
    %27 = arith.subf %19, %24 : vector<40x128xf32>
    %28 = math.absf %27 : vector<40x128xf32>
    %29 = vector.shape_cast %26 : vector<40x128xf32> to vector<5x8x128xf32>
    %cst_11 = arith.constant dense<0.000000e+00> : vector<8x128xf32>
    %30 = vector.multi_reduction <add>, %29, %cst_11 [0] : vector<5x8x128xf32> to vector<8x128xf32>
    %c0_12 = arith.constant 0 : index
    %c0_13 = arith.constant 0 : index
    %c0_14 = arith.constant 0 : index
    %31 = vector.load %arg4[%c0_12, %c0_13, %c0_14] : memref<1x8x128xf32, #tpu.memory_space<vmem>>, vector<1x8x128xf32>
    %32 = vector.shape_cast %31 : vector<1x8x128xf32> to vector<8x128xf32>
    %33 = vector.shape_cast %30 : vector<8x128xf32> to vector<1x8x128xf32>
    tpu.vector_store %arg4[%c0_12, %c0_13, %c0_14], %33 {strides = array<i32>} : memref<1x8x128xf32, #tpu.memory_space<vmem>>, vector<1x8x128xf32>,
    %34 = vector.shape_cast %28 : vector<40x128xf32> to vector<5x8x128xf32>
    %cst_15 = arith.constant dense<0.000000e+00> : vector<8x128xf32>
    %35 = vector.multi_reduction <add>, %34, %cst_15 [0] : vector<5x8x128xf32> to vector<8x128xf32>
    %c0_16 = arith.constant 0 : index
    %c0_17 = arith.constant 0 : index
    %c0_18 = arith.constant 0 : index
    %36 = vector.load %arg5[%c0_16, %c0_17, %c0_18] : memref<1x8x128xf32, #tpu.memory_space<vmem>>, vector<1x8x128xf32>
    %37 = vector.shape_cast %36 : vector<1x8x128xf32> to vector<8x128xf32>
    %38 = vector.shape_cast %35 : vector<8x128xf32> to vector<1x8x128xf32>
    tpu.vector_store %arg5[%c0_16, %c0_17, %c0_18], %38 {strides = array<i32>} : memref<1x8x128xf32, #tpu.memory_space<vmem>>, vector<1x8x128xf32>,
    return
  }
  func.func @transform_0(%arg0: i32) -> (i32, i32) {
    %c0_i32 = arith.constant 0 : i32
    %c0_i32_0 = arith.constant 0 : i32
    return %arg0, %c0_i32 : i32, i32
  }
  func.func @transform_1(%arg0: i32) -> (i32, i32) {
    %c0_i32 = arith.constant 0 : i32
    %c0_i32_0 = arith.constant 0 : i32
    %c0_i32_1 = arith.constant 0 : i32
    return %c0_i32, %c0_i32_0 : i32, i32
  }
  func.func @transform_2(%arg0: i32) -> (i32, i32) {
    %c0_i32 = arith.constant 0 : i32
    %c0_i32_0 = arith.constant 0 : i32
    %c0_i32_1 = arith.constant 0 : i32
    return %c0_i32, %c0_i32_0 : i32, i32
  }
  func.func @transform_3(%arg0: i32) -> (i32, i32, i32) {
    %c0_i32 = arith.constant 0 : i32
    %c0_i32_0 = arith.constant 0 : i32
    %c0_i32_1 = arith.constant 0 : i32
    return %arg0, %c0_i32, %c0_i32_0 : i32, i32, i32
  }
  func.func @transform_4(%arg0: i32) -> (i32, i32, i32) {
    %c0_i32 = arith.constant 0 : i32
    %c0_i32_0 = arith.constant 0 : i32
    %c0_i32_1 = arith.constant 0 : i32
    return %arg0, %c0_i32, %c0_i32_0 : i32, i32, i32
  }
}

module attributes {stable_mosaic.version = 11 : i64} {
  func.func @_mel_l1_kernel(%arg0: i32, %arg1: memref<144x64xf32, #tpu.memory_space<vmem>>, %arg2: memref<64x256xf32, #tpu.memory_space<vmem>>, %arg3: memref<128x128xf32, #tpu.memory_space<vmem>>, %arg4: memref<1x8x128xf32, #tpu.memory_space<vmem>>, %arg5: memref<1x8x128xf32, #tpu.memory_space<vmem>>) attributes {dimension_semantics = [#tpu.dimension_semantics<parallel>], iteration_bounds = array<i64: 1>, scalar_prefetch = 0 : i64, scratch_operands = 0 : i64, tpu.core_type = #tpu.core_type<tc>, window_params = [{transform_indices = @transform_0, window_bounds = array<i64: 144, 64>}, {pipeline_mode = #tpu.pipeline_mode<synchronous>, transform_indices = @transform_1, window_bounds = array<i64: 64, 256>}, {pipeline_mode = #tpu.pipeline_mode<synchronous>, transform_indices = @transform_2, window_bounds = array<i64: 128, 128>}, {transform_indices = @transform_3, window_bounds = array<i64: 1, 8, 128>}, {transform_indices = @transform_4, window_bounds = array<i64: 1, 8, 128>}]} {
    %c0 = arith.constant 0 : index
    %c0_0 = arith.constant 0 : index
    %0 = vector.load %arg1[%c0, %c0_0] : memref<144x64xf32, #tpu.memory_space<vmem>>, vector<144x64xf32>
    %c0_1 = arith.constant 0 : index
    %c0_2 = arith.constant 0 : index
    %1 = vector.load %arg2[%c0_1, %c0_2] : memref<64x256xf32, #tpu.memory_space<vmem>>, vector<64x256xf32>
    %cst = arith.constant dense<0.000000e+00> : vector<144x256xf32>
    %2 = tpu.matmul %0, %1, %cst {dimension_numbers = #tpu.dot_dimension_numbers<[1], [0], [0], [1], [0, 0, 1, 1], [], []>} : vector<144x64xf32>, vector<64x256xf32>, vector<144x256xf32> -> vector<144x256xf32>
    %3 = vector.extract_strided_slice %2 {offsets = [0, 0], sizes = [144, 128], strides = [1, 1]} : vector<144x256xf32> to vector<144x128xf32>
    %4 = vector.extract_strided_slice %2 {offsets = [0, 128], sizes = [144, 128], strides = [1, 1]} : vector<144x256xf32> to vector<144x128xf32>
    %5 = arith.mulf %3, %3 : vector<144x128xf32>
    %6 = arith.mulf %4, %4 : vector<144x128xf32>
    %7 = arith.addf %5, %6 : vector<144x128xf32>
    %cst_3 = arith.constant 1.000000e-30 : f32
    %8 = vector.broadcast %cst_3 : f32 to vector<144x128xf32>
    %9 = arith.maximumf %7, %8 : vector<144x128xf32>
    %10 = math.sqrt %9 : vector<144x128xf32>
    %c0_4 = arith.constant 0 : index
    %c0_5 = arith.constant 0 : index
    %11 = vector.load %arg3[%c0_4, %c0_5] : memref<128x128xf32, #tpu.memory_space<vmem>>, vector<128x128xf32>
    %cst_6 = arith.constant dense<0.000000e+00> : vector<144x128xf32>
    %12 = tpu.matmul %10, %11, %cst_6 {dimension_numbers = #tpu.dot_dimension_numbers<[1], [0], [0], [1], [0, 0, 1, 1], [], []>} : vector<144x128xf32>, vector<128x128xf32>, vector<144x128xf32> -> vector<144x128xf32>
    %13 = vector.extract_strided_slice %12 {offsets = [0, 0], sizes = [72, 128], strides = [1, 1]} : vector<144x128xf32> to vector<72x128xf32>
    %14 = vector.extract_strided_slice %12 {offsets = [72, 0], sizes = [72, 128], strides = [1, 1]} : vector<144x128xf32> to vector<72x128xf32>
    %cst_7 = arith.constant 9.99999974E-6 : f32
    %15 = vector.broadcast %cst_7 : f32 to vector<72x128xf32>
    %16 = arith.maximumf %13, %15 : vector<72x128xf32>
    %17 = math.log %16 : vector<72x128xf32>
    %cst_8 = arith.constant 0.868588984 : f32
    %18 = vector.broadcast %cst_8 : f32 to vector<72x128xf32>
    %19 = arith.mulf %18, %17 : vector<72x128xf32>
    %cst_9 = arith.constant 9.99999974E-6 : f32
    %20 = vector.broadcast %cst_9 : f32 to vector<72x128xf32>
    %21 = arith.maximumf %14, %20 : vector<72x128xf32>
    %22 = math.log %21 : vector<72x128xf32>
    %cst_10 = arith.constant 0.868588984 : f32
    %23 = vector.broadcast %cst_10 : f32 to vector<72x128xf32>
    %24 = arith.mulf %23, %22 : vector<72x128xf32>
    %25 = arith.subf %13, %14 : vector<72x128xf32>
    %26 = math.absf %25 : vector<72x128xf32>
    %27 = arith.subf %19, %24 : vector<72x128xf32>
    %28 = math.absf %27 : vector<72x128xf32>
    %29 = vector.shape_cast %26 : vector<72x128xf32> to vector<9x8x128xf32>
    %cst_11 = arith.constant dense<0.000000e+00> : vector<8x128xf32>
    %30 = vector.multi_reduction <add>, %29, %cst_11 [0] : vector<9x8x128xf32> to vector<8x128xf32>
    %c0_12 = arith.constant 0 : index
    %c0_13 = arith.constant 0 : index
    %c0_14 = arith.constant 0 : index
    %31 = vector.load %arg4[%c0_12, %c0_13, %c0_14] : memref<1x8x128xf32, #tpu.memory_space<vmem>>, vector<1x8x128xf32>
    %32 = vector.shape_cast %31 : vector<1x8x128xf32> to vector<8x128xf32>
    %33 = vector.shape_cast %30 : vector<8x128xf32> to vector<1x8x128xf32>
    tpu.vector_store %arg4[%c0_12, %c0_13, %c0_14], %33 {strides = array<i32>} : memref<1x8x128xf32, #tpu.memory_space<vmem>>, vector<1x8x128xf32>,
    %34 = vector.shape_cast %28 : vector<72x128xf32> to vector<9x8x128xf32>
    %cst_15 = arith.constant dense<0.000000e+00> : vector<8x128xf32>
    %35 = vector.multi_reduction <add>, %34, %cst_15 [0] : vector<9x8x128xf32> to vector<8x128xf32>
    %c0_16 = arith.constant 0 : index
    %c0_17 = arith.constant 0 : index
    %c0_18 = arith.constant 0 : index
    %36 = vector.load %arg5[%c0_16, %c0_17, %c0_18] : memref<1x8x128xf32, #tpu.memory_space<vmem>>, vector<1x8x128xf32>
    %37 = vector.shape_cast %36 : vector<1x8x128xf32> to vector<8x128xf32>
    %38 = vector.shape_cast %35 : vector<8x128xf32> to vector<1x8x128xf32>
    tpu.vector_store %arg5[%c0_16, %c0_17, %c0_18], %38 {strides = array<i32>} : memref<1x8x128xf32, #tpu.memory_space<vmem>>, vector<1x8x128xf32>,
    return
  }
  func.func @transform_0(%arg0: i32) -> (i32, i32) {
    %c0_i32 = arith.constant 0 : i32
    %c0_i32_0 = arith.constant 0 : i32
    return %arg0, %c0_i32 : i32, i32
  }
  func.func @transform_1(%arg0: i32) -> (i32, i32) {
    %c0_i32 = arith.constant 0 : i32
    %c0_i32_0 = arith.constant 0 : i32
    %c0_i32_1 = arith.constant 0 : i32
    return %c0_i32, %c0_i32_0 : i32, i32
  }
  func.func @transform_2(%arg0: i32) -> (i32, i32) {
    %c0_i32 = arith.constant 0 : i32
    %c0_i32_0 = arith.constant 0 : i32
    %c0_i32_1 = arith.constant 0 : i32
    return %c0_i32, %c0_i32_0 : i32, i32
  }
  func.func @transform_3(%arg0: i32) -> (i32, i32, i32) {
    %c0_i32 = arith.constant 0 : i32
    %c0_i32_0 = arith.constant 0 : i32
    %c0_i32_1 = arith.constant 0 : i32
    return %arg0, %c0_i32, %c0_i32_0 : i32, i32, i32
  }
  func.func @transform_4(%arg0: i32) -> (i32, i32, i32) {
    %c0_i32 = arith.constant 0 : i32
    %c0_i32_0 = arith.constant 0 : i32
    %c0_i32_1 = arith.constant 0 : i32
    return %arg0, %c0_i32, %c0_i32_0 : i32, i32, i32
  }
}

</mosaic_0001>

<bundles_post_ra>
// kernel: mel_spectrogram_loss.2
= control target key start
LH: loop header
LB: loop body
LE: loop exit
PB: predicated region body
PF: predicated region fallthrough
CT: control target
= control target key end

     0   :  { %v680_v3 = vmov 0.0   ;;  %s904_s1 = inlined_call_operand.vmem [shape: f32[128,256], index: 1, kind: input, shape index: {}]   ;;  %s905_s2 = inlined_call_operand.vmem [shape: f32[128,128], index: 2, kind: input, shape index: {}]   ;;  %s906_s0 = inlined_call_operand.vmem [shape: f32[80,128], index: 0, kind: input, shape index: {}]   ;;  %s907_s3 = inlined_call_operand.vmem [shape: f32[1,8,128], index: 3, kind: output, shape index: {0}]   ;;  %s908_s4 = inlined_call_operand.vmem [shape: f32[1,8,128], index: 4, kind: output, shape index: {1}]  }
   0x1   :  { %v27_v0 = vld [vmem:[%s904_s1 + $0x8] sm:$0xff]  ;;  %v29_v1 = vld [vmem:[%s904_s1 + $0x18] sm:$0xff]  ;;  %v26_v2 = vld [vmem:[%s904_s1] sm:$0xff]  ;;  %122 = vmatprep.mubr.f32.mxu0 %v680_v3 }
   0x2   :  { %v575_v4 = vpack.c.bf16 %v29_v1, %v27_v0  ;;  %v28_v5 = vld [vmem:[%s904_s1 + $0x10] sm:$0xff]  ;;  %v31_v6 = vld [vmem:[%s904_s1 + $0x28] sm:$0xff]  ;;  %v33_v7 = vld [vmem:[%s904_s1 + $0x38] sm:$0xff] }
   0x3   :  { %v577_v8 = vpack.c.bf16 %v28_v5, %v26_v2  ;;  %v579_v9 = vpack.c.bf16 %v33_v7, %v31_v6  ;;  %v30_v10 = vld [vmem:[%s904_s1 + $0x20] sm:$0xff]  ;;  %v32_v11 = vld [vmem:[%s904_s1 + $0x30] sm:$0xff]  ;;  %v35_v12 = vld [vmem:[%s904_s1 + $0x48] sm:$0xff] }
   0x4   :  { %576 = vmatprep.subr.bf16.mxu0 %v575_v4  ;;  %v37_v13 = vld [vmem:[%s904_s1 + $0x58] sm:$0xff]  ;;  %v581_v14 = vpack.c.bf16 %v32_v11, %v30_v10  ;;  %v34_v16 = vld [vmem:[%s904_s1 + $0x40] sm:$0xff]  ;;  %v36_v17 = vld [vmem:[%s904_s1 + $0x50] sm:$0xff] }
   0x5   :  { %578 = vmatpush1.bf16.msra.mxu0 %v577_v8  ;;  %v583_v15 = vpack.c.bf16 %v37_v13, %v35_v12  ;;  %v39_v18 = vld [vmem:[%s904_s1 + $0x68] sm:$0xff]  ;;  %v41_v19 = vld [vmem:[%s904_s1 + $0x78] sm:$0xff]  ;;  %v585_v20 = vpack.c.bf16 %v36_v17, %v34_v16  ;;  %v38_v22 = vld [vmem:[%s904_s1 + $0x60] sm:$0xff] }
   0x6   :  { %580 = vmatprep.subr.bf16.mxu0 %v579_v9  ;;  %v587_v21 = vpack.c.bf16 %v41_v19, %v39_v18  ;;  %v40_v23 = vld [vmem:[%s904_s1 + $0x70] sm:$0xff]  ;;  %v43_v24 = vld [vmem:[%s904_s1 + $0x88] sm:$0xff]  ;;  %v45_v25 = vld [vmem:[%s904_s1 + $0x98] sm:$0xff] }
   0x7   :  { %v589_v26 = vpack.c.bf16 %v40_v23, %v38_v22  ;;  %v42_v27 = vld [vmem:[%s904_s1 + $0x80] sm:$0xff]  ;;  %v591_v28 = vpack.c.bf16 %v45_v25, %v43_v24  ;;  %v44_v29 = vld [vmem:[%s904_s1 + $0x90] sm:$0xff]  ;;  %v47_v30 = vld [vmem:[%s904_s1 + $0xa8] sm:$0xff] }
   0x8   :  { %v49_v31 = vld [vmem:[%s904_s1 + $0xb8] sm:$0xff]  ;;  %v293_v32 = vld [vmem:[%s905_s2] sm:$0xff]  ;;  %v294_v33 = vld [vmem:[%s905_s2 + $0x8] sm:$0xff]  ;;  %v593_v37 = vpack.c.bf16 %v44_v29, %v42_v27 }
   0x9   :  { %582 = vmatpush1.bf16.msra.mxu0 %v581_v14  ;;  %v295_v34 = vld [vmem:[%s905_s2 + $0x10] sm:$0xff]  ;;  %v607_v35 = vpack.c.bf16 %v294_v33, %v293_v32  ;;  %v296_v36 = vld [vmem:[%s905_s2 + $0x18] sm:$0xff]  ;;  %v595_v39 = vpack.c.bf16 %v49_v31, %v47_v30  ;;  %v46_v40 = vld [vmem:[%s904_s1 + $0xa0] sm:$0xff] }
   0xa   :  { %584 = vmatprep.subr.bf16.mxu0 %v583_v15  ;;  %v611_v38 = vpack.c.bf16 %v296_v36, %v295_v34  ;;  %v48_v41 = vld [vmem:[%s904_s1 + $0xb0] sm:$0xff]  ;;  %v51_v42 = vld [vmem:[%s904_s1 + $0xc8] sm:$0xff]  ;;  %v53_v43 = vld [vmem:[%s904_s1 + $0xd8] sm:$0xff] }
   0xb   :  { %608 = vmatprep.subr.bf16.mxu1 %v607_v35  ;;  %v597_v44 = vpack.c.bf16 %v48_v41, %v46_v40  ;;  %v599_v45 = vpack.c.bf16 %v53_v43, %v51_v42  ;;  %v50_v46 = vld [vmem:[%s904_s1 + $0xc0] sm:$0xff]  ;;  %v52_v47 = vld [vmem:[%s904_s1 + $0xd0] sm:$0xff]  ;;  %v55_v48 = vld [vmem:[%s904_s1 + $0xe8] sm:$0xff] }
   0xc   :  { %610 = vmatpush3.bf16.msra.mxu1 %v607_v35  ;;  %v57_v49 = vld [vmem:[%s904_s1 + $0xf8] sm:$0xff]  ;;  %v601_v50 = vpack.c.bf16 %v52_v47, %v50_v46  ;;  %v54_v52 = vld [vmem:[%s904_s1 + $0xe0] sm:$0xff]  ;;  %v56_v53 = vld [vmem:[%s904_s1 + $0xf0] sm:$0xff] }
   0xd   :  { %586 = vmatpush1.bf16.msra.mxu0 %v585_v20  ;;  %612 = vmatprep.subr.bf16.mxu1 %v611_v38  ;;  %v603_v51 = vpack.c.bf16 %v57_v49, %v55_v48  ;;  %v605_v54 = vpack.c.bf16 %v56_v53, %v54_v52  ;;  %v16_v55 = vld [vmem:[%s906_s0] sm:$0xff]  ;;  %v17_v56 = vld [vmem:[%s906_s0 + $0x8] sm:$0xff]  ;;  %v18_v57 = vld [vmem:[%s906_s0 + $0x10] sm:$0xff] }
   0xe   :  { %588 = vmatprep.subr.bf16.mxu0 %v587_v21  ;;  %v19_v58 = vld [vmem:[%s906_s0 + $0x18] sm:$0xff]  ;;  %v20_v59 = vld [vmem:[%s906_s0 + $0x20] sm:$0xff]  ;;  %v21_v60 = vld [vmem:[%s906_s0 + $0x28] sm:$0xff] }
   0xf   :  { %v22_v61 = vld [vmem:[%s906_s0 + $0x30] sm:$0xff]  ;;  %v23_v62 = vld [vmem:[%s906_s0 + $0x38] sm:$0xff]  ;;  %v24_v63 = vld [vmem:[%s906_s0 + $0x40] sm:$0xff] }
  0x10   :  { %614 = vmatpush3.bf16.msra.mxu1 %v611_v38  ;;  %v25_v0 = vld [vmem:[%s906_s0 + $0x48] sm:$0xff]  ;;  %v297_v1 = vld [vmem:[%s905_s2 + $0x20] sm:$0xff]  ;;  %v300_v5 = vld [vmem:[%s905_s2 + $0x38] sm:$0xff] }
  0x11   :  { %590 = vmatpush1.bf16.msra.mxu0 %v589_v26  ;;  %v298_v2 = vld [vmem:[%s905_s2 + $0x28] sm:$0xff]  ;;  %v301_v7 = vld [vmem:[%s905_s2 + $0x40] sm:$0xff]  ;;  %v303_v10 = vld [vmem:[%s905_s2 + $0x50] sm:$0xff] }
  0x12   :  { %592 = vmatprep.subr.bf16.mxu0 %v591_v28  ;;  %v615_v4 = vpack.c.bf16 %v298_v2, %v297_v1  ;;  %v302_v8 = vld [vmem:[%s905_s2 + $0x48] sm:$0xff]  ;;  %v304_v11 = vld [vmem:[%s905_s2 + $0x58] sm:$0xff]  ;;  %v305_v13 = vld [vmem:[%s905_s2 + $0x60] sm:$0xff] }
  0x13   :  { %v623_v9 = vpack.c.bf16 %v302_v8, %v301_v7  ;;  %v627_v12 = vpack.c.bf16 %v304_v11, %v303_v10  ;;  %v306_v14 = vld [vmem:[%s905_s2 + $0x68] sm:$0xff]  ;;  %v307_v16 = vld [vmem:[%s905_s2 + $0x70] sm:$0xff]  ;;  %v308_v17 = vld [vmem:[%s905_s2 + $0x78] sm:$0xff] }
  0x14   :  { %616 = vmatprep.subr.bf16.mxu1 %v615_v4  ;;  %v631_v15 = vpack.c.bf16 %v306_v14, %v305_v13  ;;  %v635_v18 = vpack.c.bf16 %v308_v17, %v307_v16 }
  0x15   :  { %594 = vmatpush1.bf16.msra.mxu0 %v593_v37  ;;  %618 = vmatpush3.bf16.msra.mxu1 %v615_v4 }
  0x16   :  { %596 = vmatprep.subr.bf16.mxu0 %v595_v39 }
  0x19   :  { %598 = vmatpush1.bf16.msra.mxu0 %v597_v44 }
  0x1a   :  { %600 = vmatprep.subr.bf16.mxu0 %v599_v45 }
  0x1d   :  { %602 = vmatpush1.bf16.msra.mxu0 %v601_v50 }
  0x1e   :  { %604 = vmatprep.subr.bf16.mxu0 %v603_v51 }
  0x21   :  { %606 = vmatpush1.bf16.msra.mxu0 %v605_v54 }
  0x24   :  { %123 = vmatmul.mubr.f32.vlgmr.msra.gmra.mrb[0].mxu0 %v16_v55 }
  0x25   :  { %128 = vmatprep.mubr.f32.mxu0 %v680_v3 }
  0x28   :  { %129 = vmatmul.mubr.f32.gmra.mrb[2].mxu0 %v17_v56 }
  0x29   :  { %134 = vmatprep.mubr.f32.mxu0 %v680_v3 }
  0x2c   :  { %135 = vmatmul.mubr.f32.gmra.mrb[4].mxu0 %v18_v57 }
  0x2d   :  { %140 = vmatprep.mubr.f32.mxu0 %v680_v3 }
  0x30   :  { %141 = vmatmul.mubr.f32.gmra.mrb[6].mxu0 %v19_v58 }
  0x31   :  { %146 = vmatprep.mubr.f32.mxu0 %v680_v3 }
  0x34   :  { %147 = vmatmul.mubr.f32.gmra.mrb[8].mxu0 %v20_v59 }
  0x35   :  { %152 = vmatprep.mubr.f32.mxu0 %v680_v3 }
  0x38   :  { %153 = vmatmul.mubr.f32.gmra.mrb[10].mxu0 %v21_v60 }
  0x39   :  { %158 = vmatprep.mubr.f32.mxu0 %v680_v3 }
  0x3c   :  { %159 = vmatmul.mubr.f32.gmra.mrb[12].mxu0 %v22_v61 }
  0x3d   :  { %164 = vmatprep.mubr.f32.mxu0 %v680_v3 }
  0x40   :  { %165 = vmatmul.mubr.f32.gmra.mrb[14].mxu0 %v23_v62 }
  0x41   :  { %170 = vmatprep.mubr.f32.mxu0 %v680_v3 }
  0x44   :  { %171 = vmatmul.mubr.f32.gmra.mrb[16].mxu0 %v24_v63 }
  0x45   :  { %176 = vmatprep.mubr.f32.mxu0 %v680_v3  ;;  %v299_v3 = vld [vmem:[%s905_s2 + $0x30] sm:$0xff] }
  0x46   :  { %v619_v6 = vpack.c.bf16 %v300_v5, %v299_v3 }
  0x48   :  { %177 = vmatmul.mubr.f32.gmra.mrb[18].mxu0 %v25_v0  ;;  %620 = vmatprep.subr.bf16.mxu1 %v619_v6 }
  0x49   :  { %622 = vmatpush3.bf16.msra.mxu1 %v619_v6 }
  0x4a   :  { %624 = vmatprep.subr.bf16.mxu1 %v623_v9 }
  0x4d   :  { %626 = vmatpush3.bf16.msra.mxu1 %v623_v9 }
  0x4e   :  { %628 = vmatprep.subr.bf16.mxu1 %v627_v12 }
  0x51   :  { %630 = vmatpush3.bf16.msra.mxu1 %v627_v12 }
  0x52   :  { %632 = vmatprep.subr.bf16.mxu1 %v631_v15 }
  0x55   :  { %634 = vmatpush3.bf16.msra.mxu1 %v631_v15 }
  0x56   :  { %636 = vmatprep.subr.bf16.mxu1 %v635_v18 }
  0x59   :  { %638 = vmatpush3.bf16.msra.mxu1 %v635_v18 }
  0xf7   :  { %v124_v19 = vpop.f32.mrb[0].mxu0 }
  0xf8   :  { %v183_v20 = vmul.f32 %v124_v19, %v124_v19  ;;  %v126_v21 = vpop.f32.mrb[1].mxu0 }
  0xf9   :  { %v193_v22 = vmul.f32 %v126_v21, %v126_v21 }
  0xfb   :  { %v203_v23 = vadd.f32 %v193_v22, %v183_v20  ;;  %v130_v24 = vpop.f32.mrb[2].mxu0 }
  0xfc   :  { %v184_v25 = vmul.f32 %v130_v24, %v130_v24  ;;  %v132_v26 = vpop.f32.mrb[3].mxu0 }
  0xfd   :  { %v213_v27 = vmax.f32 %v203_v23, 1e-30  ;;  %v194_v28 = vmul.f32 %v132_v26, %v132_v26 }
  0xff   :  { %v204_v29 = vadd.f32 %v194_v28, %v184_v25  ;;  %v136_v30 = vpop.f32.mrb[4].mxu0  ;;  %640 = vrsqrt.f32 %v213_v27  ;;  %vm225_vm0 = vcmp.eq.f32.partialorder %v213_v27, inf  ;;  %v228_v51 = vand.u32 2147483648, %v213_v27 }
 0x100   :  { %v185_v31 = vmul.f32 %v136_v30, %v136_v30  ;;  %v138_v32 = vpop.f32.mrb[5].mxu0  ;;  %vm227_vm1 = vcmp.eq.f32.partialorder %v213_v27, 0.0 }
 0x101   :  { %v214_v33 = vmax.f32 %v204_v29, 1e-30  ;;  %v195_v34 = vmul.f32 %v138_v32, %v138_v32 }
 0x103   :  { %v205_v35 = vadd.f32 %v195_v34, %v185_v31  ;;  %v142_v36 = vpop.f32.mrb[6].mxu0  ;;  %642 = vrsqrt.f32 %v214_v33  ;;  %vm232_vm2 = vcmp.eq.f32.partialorder %v214_v33, inf  ;;  %v235_v62 = vand.u32 2147483648, %v214_v33 }
 0x104   :  { %v186_v37 = vmul.f32 %v142_v36, %v142_v36  ;;  %v144_v38 = vpop.f32.mrb[7].mxu0  ;;  %vm234_vm3 = vcmp.eq.f32.partialorder %v214_v33, 0.0 }
 0x105   :  { %v215_v39 = vmax.f32 %v205_v35, 1e-30  ;;  %v196_v40 = vmul.f32 %v144_v38, %v144_v38 }
 0x107   :  { %v206_v41 = vadd.f32 %v196_v40, %v186_v37  ;;  %v148_v42 = vpop.f32.mrb[8].mxu0  ;;  %644 = vrsqrt.f32 %v215_v39  ;;  %vm239_vm4 = vcmp.eq.f32.partialorder %v215_v39, inf  ;;  %v242_v9 = vand.u32 2147483648, %v215_v39 }
 0x108   :  { %v187_v43 = vmul.f32 %v148_v42, %v148_v42  ;;  %v150_v44 = vpop.f32.mrb[9].mxu0  ;;  %vm241_vm5 = vcmp.eq.f32.partialorder %v215_v39, 0.0 }
 0x109   :  { %v641_v45 = vpop.eup %640  ;;  %v216_v46 = vmax.f32 %v206_v41, 1e-30  ;;  %v197_v47 = vmul.f32 %v150_v44, %v150_v44 }
 0x10a   :  { %v224_v48 = vmul.f32 %v641_v45, %v213_v27 }
 0x10b   :  { %v207_v49 = vadd.f32 %v197_v47, %v187_v43  ;;  %v154_v50 = vpop.f32.mrb[10].mxu0  ;;  %646 = vrsqrt.f32 %v216_v46  ;;  %vm246_vm6 = vcmp.eq.f32.partialorder %v216_v46, inf  ;;  %v249_v20 = vand.u32 2147483648, %v216_v46 }
 0x10c   :  { %v188_v52 = vmul.f32 %v154_v50, %v154_v50  ;;  %v156_v53 = vpop.f32.mrb[11].mxu0  ;;  %v226_v54 = vsel %vm225_vm0, %v213_v27, %v224_v48  ;;  %vm248_vm7 = vcmp.eq.f32.partialorder %v216_v46, 0.0 }
 0x10d   :  { %v643_v55 = vpop.eup %642  ;;  %v890_v56 = vmax.f32 %v207_v49, 1e-30  ;;  %v198_v57 = vmul.f32 %v156_v53, %v156_v53  ;;  %v229_v58 = vsel %vm227_vm1, %v228_v51, %v226_v54 }
 0x10e   :  { %560 = vmatprep.mubr.f32.mxu1 %v229_v58  ;;  %v231_v59 = vmul.f32 %v643_v55, %v214_v33 }
 0x10f   :  { %v208_v60 = vadd.f32 %v198_v57, %v188_v52  ;;  %v160_v61 = vpop.f32.mrb[12].mxu0  ;;  %648 = vrsqrt.f32 %v890_v56  ;;  %vm253_vm8 = vcmp.eq.f32.partialorder %v890_v56, inf  ;;  %v256_v31 = vand.u32 2147483648, %v890_v56 }
 0x110   :  { %v189_v63 = vmul.f32 %v160_v61, %v160_v61  ;;  %v162_v0 = vpop.f32.mrb[13].mxu0  ;;  %v233_v1 = vsel %vm232_vm2, %v214_v33, %v231_v59  ;;  %vm255_vm9 = vcmp.eq.f32.partialorder %v890_v56, 0.0 }
 0x111   :  { %v645_v2 = vpop.eup %644  ;;  %v218_v4 = vmax.f32 %v208_v60, 1e-30  ;;  %v199_v3 = vmul.f32 %v162_v0, %v162_v0  ;;  %v236_v5 = vsel %vm234_vm3, %v235_v62, %v233_v1 }
 0x112   :  { %561 = vmatmul.mubr.f32.vlgmr.msra.gmra.mrb[0].mxu1 %v236_v5  ;;  %v238_v6 = vmul.f32 %v645_v2, %v215_v39 }
 0x113   :  { %v209_v7 = vadd.f32 %v199_v3, %v189_v63  ;;  %v166_v8 = vpop.f32.mrb[14].mxu0  ;;  %650 = vrsqrt.f32 %v218_v4  ;;  %vm260_vm10 = vcmp.eq.f32.partialorder %v218_v4, inf  ;;  %v263_v41 = vand.u32 2147483648, %v218_v4 }
 0x114   :  { %v190_v10 = vmul.f32 %v166_v8, %v166_v8  ;;  %v168_v11 = vpop.f32.mrb[15].mxu0  ;;  %v240_v12 = vsel %vm239_vm4, %v215_v39, %v238_v6  ;;  %vm262_vm11 = vcmp.eq.f32.partialorder %v218_v4, 0.0 }
 0x115   :  { %v647_v13 = vpop.eup %646  ;;  %v219_v14 = vmax.f32 %v209_v7, 1e-30  ;;  %v200_v15 = vmul.f32 %v168_v11, %v168_v11  ;;  %v243_v16 = vsel %vm241_vm5, %v242_v9, %v240_v12 }
 0x116   :  { %563 = vmatprep.mubr.f32.mxu1 %v243_v16  ;;  %v245_v17 = vmul.f32 %v647_v13, %v216_v46 }
 0x117   :  { %v210_v18 = vadd.f32 %v200_v15, %v190_v10  ;;  %v172_v19 = vpop.f32.mrb[16].mxu0  ;;  %652 = vrsqrt.f32 %v219_v14  ;;  %vm267_vm12 = vcmp.eq.f32.partialorder %v219_v14, inf  ;;  %v270_v47 = vand.u32 2147483648, %v219_v14 }
 0x118   :  { %v191_v21 = vmul.f32 %v172_v19, %v172_v19  ;;  %v174_v22 = vpop.f32.mrb[17].mxu0  ;;  %v247_v23 = vsel %vm246_vm6, %v216_v46, %v245_v17  ;;  %vm269_vm13 = vcmp.eq.f32.partialorder %v219_v14, 0.0 }
 0x119   :  { %v649_v24 = vpop.eup %648  ;;  %v220_v25 = vmax.f32 %v210_v18, 1e-30  ;;  %v201_v26 = vmul.f32 %v174_v22, %v174_v22  ;;  %v250_v27 = vsel %vm248_vm7, %v249_v20, %v247_v23 }
 0x11a   :  { %564 = vmatmul.mubr.f32.gmra.mrb[2].mxu1 %v250_v27  ;;  %v252_v28 = vmul.f32 %v649_v24, %v890_v56 }
 0x11b   :  { %v211_v29 = vadd.f32 %v201_v26, %v191_v21  ;;  %v178_v30 = vpop.f32.mrb[18].mxu0  ;;  %654 = vrsqrt.f32 %v220_v25  ;;  %vm274_vm14 = vcmp.eq.f32.partialorder %v220_v25, inf  ;;  %v277_v52 = vand.u32 2147483648, %v220_v25 }
 0x11c   :  { %v192_v32 = vmul.f32 %v178_v30, %v178_v30  ;;  %v180_v33 = vpop.f32.mrb[19].mxu0  ;;  %v254_v34 = vsel %vm253_vm8, %v890_v56, %v252_v28  ;;  %vm276_vm15 = vcmp.eq.f32.partialorder %v220_v25, 0.0 }
 0x11d   :  { %v651_v35 = vpop.eup %650  ;;  %v221_v36 = vmax.f32 %v211_v29, 1e-30  ;;  %v202_v37 = vmul.f32 %v180_v33, %v180_v33  ;;  %v257_v38 = vsel %vm255_vm9, %v256_v31, %v254_v34 }
 0x11e   :  { %566 = vmatprep.mubr.f32.mxu1 %v257_v38  ;;  %v259_v39 = vmul.f32 %v651_v35, %v218_v4 }
 0x11f   :  { %v212_v40 = vadd.f32 %v202_v37, %v192_v32  ;;  %656 = vrsqrt.f32 %v221_v36  ;;  %vm281_vm0 = vcmp.eq.f32.partialorder %v221_v36, inf  ;;  %v284_v57 = vand.u32 2147483648, %v221_v36 }
 0x120   :  { %v261_v42 = vsel %vm260_vm10, %v218_v4, %v259_v39  ;;  %vm283_vm1 = vcmp.eq.f32.partialorder %v221_v36, 0.0 }
 0x121   :  { %v653_v43 = vpop.eup %652  ;;  %v222_v44 = vmax.f32 %v212_v40, 1e-30  ;;  %v264_v45 = vsel %vm262_vm11, %v263_v41, %v261_v42 }
 0x122   :  { %567 = vmatmul.mubr.f32.gmra.mrb[4].mxu1 %v264_v45  ;;  %v266_v46 = vmul.f32 %v653_v43, %v219_v14 }
 0x123   :  { %658 = vrsqrt.f32 %v222_v44  ;;  %vm288_vm2 = vcmp.eq.f32.partialorder %v222_v44, inf  ;;  %v291_v62 = vand.u32 2147483648, %v222_v44  ;;  %vm290_vm3 = vcmp.eq.f32.partialorder %v222_v44, 0.0 }
 0x124   :  { %v268_v48 = vsel %vm267_vm12, %v219_v14, %v266_v46 }
 0x125   :  { %v655_v49 = vpop.eup %654  ;;  %v271_v50 = vsel %vm269_vm13, %v270_v47, %v268_v48 }
 0x126   :  { %569 = vmatprep.mubr.f32.mxu1 %v271_v50  ;;  %v273_v51 = vmul.f32 %v655_v49, %v220_v25 }
 0x128   :  { %v275_v53 = vsel %vm274_vm14, %v220_v25, %v273_v51 }
 0x129   :  { %v657_v54 = vpop.eup %656  ;;  %v278_v55 = vsel %vm276_vm15, %v277_v52, %v275_v53 }
 0x12a   :  { %570 = vmatmul.mubr.f32.gmra.mrb[6].mxu1 %v278_v55  ;;  %v280_v56 = vmul.f32 %v657_v54, %v221_v36 }
 0x12c   :  { %v282_v58 = vsel %vm281_vm0, %v221_v36, %v280_v56 }
 0x12d   :  { %v659_v59 = vpop.eup %658  ;;  %v285_v60 = vsel %vm283_vm1, %v284_v57, %v282_v58 }
 0x12e   :  { %572 = vmatprep.mubr.f32.mxu1 %v285_v60  ;;  %v287_v61 = vmul.f32 %v659_v59, %v222_v44 }
 0x130   :  { %v289_v63 = vsel %vm288_vm2, %v222_v44, %v287_v61 }
 0x131   :  { %v292_v0 = vsel %vm290_vm3, %v291_v62, %v289_v63 }
 0x132   :  { %573 = vmatmul.mubr.f32.gmra.mrb[8].mxu1 %v292_v0 }
 0x1e5   :  { %v562_v1 = vpop.f32.mrb[0].mxu1 }
 0x1e6   :  { %v375_v2 = vpop.f32.mrb[1].mxu1  ;;  %v425_v11 = vmax.f32 %v562_v1, 1e-05 }
 0x1e7   :  { %v424_v5 = vmax.f32 %v375_v2, 1e-05 }
 0x1e9   :  { %660 = vlog2.f32 %v424_v5 }
 0x1ed   :  { %v565_v4 = vpop.f32.mrb[2].mxu1 }
 0x1ee   :  { %v385_v3 = vpop.f32.mrb[3].mxu1  ;;  %v427_v19 = vmax.f32 %v565_v4, 1e-05 }
 0x1ef   :  { %v426_v10 = vmax.f32 %v385_v3, 1e-05 }
 0x1f3   :  { %v661_v13 = vpop.eup %660 }
 0x1f4   :  { %v430_v21 = vmul.f32 0.6931472, %v661_v13 }
 0x1f5   :  { %v568_v6 = vpop.f32.mrb[4].mxu1 }
 0x1f6   :  { %v444_v7 = vmax.f32 %v568_v6, 1e-05  ;;  %v464_v8 = vsub.f32 %v375_v2, %v568_v6  ;;  %v395_v9 = vpop.f32.mrb[5].mxu1  ;;  %v439_v28 = vmul.f32 0.868589, %v430_v21 }
 0x1f7   :  { %v428_v20 = vmax.f32 %v395_v9, 1e-05 }
 0x1f8   :  { %662 = vlog2.f32 %v444_v7  ;;  %v469_v22 = vand.u32 2147483647, %v464_v8 }
 0x1f9   :  { %664 = vlog2.f32 %v426_v10 }
 0x1fa   :  { %666 = vlog2.f32 %v425_v11 }
 0x1fd   :  { %v571_v12 = vpop.f32.mrb[6].mxu1 }
 0x1fe   :  { %v446_v14 = vmax.f32 %v571_v12, 1e-05  ;;  %v466_v15 = vsub.f32 %v385_v3, %v571_v12  ;;  %v405_v16 = vpop.f32.mrb[7].mxu1 }
 0x1ff   :  { %v445_v17 = vmax.f32 %v405_v16, 1e-05  ;;  %v465_v18 = vsub.f32 %v562_v1, %v405_v16 }
 0x200   :  { %668 = vlog2.f32 %v446_v14  ;;  %v471_v26 = vand.u32 2147483647, %v466_v15 }
 0x201   :  { %670 = vlog2.f32 %v445_v17  ;;  %v470_v23 = vand.u32 2147483647, %v465_v18 }
 0x202   :  { %v663_v24 = vpop.eup %662  ;;  %672 = vlog2.f32 %v428_v20 }
 0x203   :  { %v450_v25 = vmul.f32 0.6931472, %v663_v24  ;;  %v484_v27 = vadd.f32 %v470_v23, %v469_v22  ;;  %674 = vlog2.f32 %v427_v19  ;;  %v665_v32 = vpop.eup %664 }
 0x204   :  { %v667_v36 = vpop.eup %666  ;;  %v434_v40 = vmul.f32 0.6931472, %v665_v32 }
 0x205   :  { %v459_v29 = vmul.f32 0.868589, %v450_v25  ;;  %v574_v30 = vpop.f32.mrb[8].mxu1  ;;  %v485_v31 = vadd.f32 %v484_v27, %v471_v26  ;;  %v432_v43 = vmul.f32 0.6931472, %v667_v36 }
 0x206   :  { %v448_v33 = vmax.f32 %v574_v30, 1e-05  ;;  %v468_v34 = vsub.f32 %v395_v9, %v574_v30  ;;  %v415_v35 = vpop.f32.mrb[9].mxu1  ;;  %v441_v49 = vmul.f32 0.868589, %v434_v40 }
 0x207   :  { %v474_v37 = vsub.f32 %v439_v28, %v459_v29  ;;  %v447_v38 = vmax.f32 %v415_v35, 1e-05  ;;  %v467_v39 = vsub.f32 %v565_v4, %v415_v35  ;;  %v440_v53 = vmul.f32 0.868589, %v432_v43 }
 0x208   :  { %676 = vlog2.f32 %v448_v33  ;;  %v473_v46 = vand.u32 2147483647, %v468_v34 }
 0x209   :  { %678 = vlog2.f32 %v447_v38  ;;  %v472_v41 = vand.u32 2147483647, %v467_v39  ;;  %v479_v61 = vand.u32 2147483647, %v474_v37 }
 0x20a   :  { %v669_v42 = vpop.eup %668 }
 0x20b   :  { %v671_v44 = vpop.eup %670  ;;  %v454_v45 = vmul.f32 0.6931472, %v669_v42  ;;  %v486_v47 = vadd.f32 %v485_v31, %v472_v41 }
 0x20c   :  { %v452_v48 = vmul.f32 0.6931472, %v671_v44  ;;  %v673_v52 = vpop.eup %672 }
 0x20d   :  { %v461_v50 = vmul.f32 0.868589, %v454_v45  ;;  %v487_v51 = vadd.f32 %v486_v47, %v473_v46  ;;  %v675_v55 = vpop.eup %674  ;;  %v438_v58 = vmul.f32 0.6931472, %v673_v52 }
 0x20e   :  { %v460_v54 = vmul.f32 0.868589, %v452_v48  ;;  %v436_v60 = vmul.f32 0.6931472, %v675_v55 }
 0x20f   :  { %v476_v56 = vsub.f32 %v441_v49, %v461_v50  ;;  %488 = vst [vmem:[%s907_s3] sm:$0xff] %v487_v51  ;;  %v443_v3 = vmul.f32 0.868589, %v438_v58 }
 0x210   :  { %v475_v57 = vsub.f32 %v440_v53, %v460_v54  ;;  %v442_v6 = vmul.f32 0.868589, %v436_v60 }
 0x211   :  { %v481_v1 = vand.u32 2147483647, %v476_v56 }
 0x212   :  { %v677_v59 = vpop.eup %676  ;;  %v480_v62 = vand.u32 2147483647, %v475_v57 }
 0x213   :  { %v679_v63 = vpop.eup %678  ;;  %v458_v0 = vmul.f32 0.6931472, %v677_v59 }
 0x214   :  { %v489_v2 = vadd.f32 %v480_v62, %v479_v61  ;;  %v456_v4 = vmul.f32 0.6931472, %v679_v63 }
 0x215   :  { %v463_v5 = vmul.f32 0.868589, %v458_v0 }
 0x216   :  { %v462_v7 = vmul.f32 0.868589, %v456_v4  ;;  %v490_v8 = vadd.f32 %v489_v2, %v481_v1 }
 0x217   :  { %v478_v9 = vsub.f32 %v443_v3, %v463_v5 }
 0x218   :  { %v477_v10 = vsub.f32 %v442_v6, %v462_v7 }
 0x219   :  { %v483_v12 = vand.u32 2147483647, %v478_v9 }
 0x21a   :  { %v482_v11 = vand.u32 2147483647, %v477_v10 }
 0x21c   :  { %v491_v13 = vadd.f32 %v490_v8, %v482_v11 }
 0x21e   :  { %v492_v14 = vadd.f32 %v491_v13, %v483_v12 }
 0x220   :  { %493 = vst [vmem:[%s908_s4] sm:$0xff] %v492_v14 }

// kernel: mel_spectrogram_loss.3
= control target key start
LH: loop header
LB: loop body
LE: loop exit
PB: predicated region body
PF: predicated region fallthrough
CT: control target
= control target key end

     0   :  { %v1013_v3 = vmov 0.0   ;;  %vm50_vm0 = vcmask 523264   ;;  %s1319_s1 = inlined_call_operand.vmem [shape: f32[64,256], index: 1, kind: input, shape index: {}]   ;;  %s1320_s2 = inlined_call_operand.vmem [shape: f32[128,128], index: 2, kind: input, shape index: {}]   ;;  %s1321_s0 = inlined_call_operand.vmem [shape: f32[144,64], index: 0, kind: input, shape index: {}]   ;;  %s1322_s3 = inlined_call_operand.vmem [shape: f32[1,8,128], index: 3, kind: output, shape index: {0}]   ;;  %s1323_s4 = inlined_call_operand.vmem [shape: f32[1,8,128], index: 4, kind: output, shape index: {1}]  }
   0x1   :  { %v35_v0 = vld [vmem:[%s1319_s1 + $0x8] sm:$0xff]  ;;  %v37_v1 = vld [vmem:[%s1319_s1 + $0x18] sm:$0xff]  ;;  %v34_v2 = vld [vmem:[%s1319_s1] sm:$0xff]  ;;  %169 = vmatprep.mubr.f32.mxu0 %v1013_v3 }
   0x2   :  { %v892_v4 = vpack.c.bf16 %v37_v1, %v35_v0  ;;  %v36_v5 = vld [vmem:[%s1319_s1 + $0x10] sm:$0xff]  ;;  %v39_v6 = vld [vmem:[%s1319_s1 + $0x28] sm:$0xff]  ;;  %v41_v7 = vld [vmem:[%s1319_s1 + $0x38] sm:$0xff] }
   0x3   :  { %v894_v8 = vpack.c.bf16 %v36_v5, %v34_v2  ;;  %v896_v9 = vpack.c.bf16 %v41_v7, %v39_v6  ;;  %v38_v10 = vld [vmem:[%s1319_s1 + $0x20] sm:$0xff]  ;;  %v40_v11 = vld [vmem:[%s1319_s1 + $0x30] sm:$0xff]  ;;  %v43_v12 = vld [vmem:[%s1319_s1 + $0x48] sm:$0xff] }
   0x4   :  { %893 = vmatprep.subr.bf16.mxu0 %v892_v4  ;;  %v45_v13 = vld [vmem:[%s1319_s1 + $0x58] sm:$0xff]  ;;  %v898_v14 = vpack.c.bf16 %v40_v11, %v38_v10  ;;  %v42_v16 = vld [vmem:[%s1319_s1 + $0x40] sm:$0xff]  ;;  %v44_v17 = vld [vmem:[%s1319_s1 + $0x50] sm:$0xff] }
   0x5   :  { %895 = vmatpush1.bf16.msra.mxu0 %v894_v8  ;;  %v900_v15 = vpack.c.bf16 %v45_v13, %v43_v12  ;;  %v47_v18 = vld [vmem:[%s1319_s1 + $0x68] sm:$0xff]  ;;  %v49_v19 = vld [vmem:[%s1319_s1 + $0x78] sm:$0xff]  ;;  %v902_v20 = vpack.c.bf16 %v44_v17, %v42_v16  ;;  %v46_v22 = vld [vmem:[%s1319_s1 + $0x60] sm:$0xff] }
   0x6   :  { %897 = vmatprep.subr.bf16.mxu0 %v896_v9  ;;  %v904_v21 = vpack.c.bf16 %v49_v19, %v47_v18  ;;  %v48_v23 = vld [vmem:[%s1319_s1 + $0x70] sm:$0xff]  ;;  %v476_v24 = vld [vmem:[%s1320_s2] sm:$0xff]  ;;  %v477_v25 = vld [vmem:[%s1320_s2 + $0x8] sm:$0xff] }
   0x7   :  { %v906_v26 = vpack.c.bf16 %v48_v23, %v46_v22  ;;  %v908_v27 = vpack.c.bf16 %v477_v25, %v476_v24  ;;  %v478_v28 = vld [vmem:[%s1320_s2 + $0x10] sm:$0xff]  ;;  %v479_v29 = vld [vmem:[%s1320_s2 + $0x18] sm:$0xff]  ;;  %v16_v31 = vld [vmem:[%s1321_s0] sm:$0xff] }
   0x8   :  { %v912_v30 = vpack.c.bf16 %v479_v29, %v478_v28  ;;  %v17_v32 = vld [vmem:[%s1321_s0 + $0x8] sm:$0xff]  ;;  %v18_v33 = vld [vmem:[%s1321_s0 + $0x10] sm:$0xff]  ;;  %v19_v34 = vld [vmem:[%s1321_s0 + $0x18] sm:$0xff] }
   0x9   :  { %899 = vmatpush1.bf16.msra.mxu0 %v898_v14  ;;  %909 = vmatprep.subr.bf16.mxu1 %v908_v27  ;;  %v20_v35 = vld [vmem:[%s1321_s0 + $0x20] sm:$0xff]  ;;  %v21_v36 = vld [vmem:[%s1321_s0 + $0x28] sm:$0xff]  ;;  %v22_v37 = vld [vmem:[%s1321_s0 + $0x30] sm:$0xff] }
   0xa   :  { %901 = vmatprep.subr.bf16.mxu0 %v900_v15  ;;  %911 = vmatpush3.bf16.msra.mxu1 %v908_v27  ;;  %v23_v38 = vld [vmem:[%s1321_s0 + $0x38] sm:$0xff]  ;;  %v24_v39 = vld [vmem:[%s1321_s0 + $0x40] sm:$0xff]  ;;  %v25_v40 = vld [vmem:[%s1321_s0 + $0x48] sm:$0xff] }
   0xb   :  { %913 = vmatprep.subr.bf16.mxu1 %v912_v30  ;;  %v26_v41 = vld [vmem:[%s1321_s0 + $0x50] sm:$0xff]  ;;  %v27_v42 = vld [vmem:[%s1321_s0 + $0x58] sm:$0xff]  ;;  %v28_v43 = vld [vmem:[%s1321_s0 + $0x60] sm:$0xff] }
   0xc   :  { %v29_v44 = vld [vmem:[%s1321_s0 + $0x68] sm:$0xff]  ;;  %v30_v45 = vld [vmem:[%s1321_s0 + $0x70] sm:$0xff]  ;;  %v31_v46 = vld [vmem:[%s1321_s0 + $0x78] sm:$0xff] }
   0xd   :  { %903 = vmatpush1.bf16.msra.mxu0 %v902_v20  ;;  %v32_v47 = vld [vmem:[%s1321_s0 + $0x80] sm:$0xff]  ;;  %v33_v48 = vld [vmem:[%s1321_s0 + $0x88] sm:$0xff]  ;;  %v482_v52 = vld [vmem:[%s1320_s2 + $0x30] sm:$0xff] }
   0xe   :  { %905 = vmatprep.subr.bf16.mxu0 %v904_v21  ;;  %915 = vmatpush3.bf16.msra.mxu1 %v912_v30  ;;  %v480_v49 = vld [vmem:[%s1320_s2 + $0x20] sm:$0xff]  ;;  %v481_v50 = vld [vmem:[%s1320_s2 + $0x28] sm:$0xff]  ;;  %v483_v53 = vld [vmem:[%s1320_s2 + $0x38] sm:$0xff] }
   0xf   :  { %v916_v51 = vpack.c.bf16 %v481_v50, %v480_v49  ;;  %v920_v54 = vpack.c.bf16 %v483_v53, %v482_v52  ;;  %v484_v55 = vld [vmem:[%s1320_s2 + $0x40] sm:$0xff]  ;;  %v485_v56 = vld [vmem:[%s1320_s2 + $0x48] sm:$0xff]  ;;  %v486_v58 = vld [vmem:[%s1320_s2 + $0x50] sm:$0xff] }
  0x10   :  { %v924_v57 = vpack.c.bf16 %v485_v56, %v484_v55  ;;  %v487_v59 = vld [vmem:[%s1320_s2 + $0x58] sm:$0xff]  ;;  %v488_v61 = vld [vmem:[%s1320_s2 + $0x60] sm:$0xff]  ;;  %v489_v62 = vld [vmem:[%s1320_s2 + $0x68] sm:$0xff] }
  0x11   :  { %907 = vmatpush1.bf16.msra.mxu0 %v906_v26  ;;  %917 = vmatprep.subr.bf16.mxu1 %v916_v51  ;;  %v928_v60 = vpack.c.bf16 %v487_v59, %v486_v58  ;;  %v932_v63 = vpack.c.bf16 %v489_v62, %v488_v61  ;;  %v490_v0 = vld [vmem:[%s1320_s2 + $0x70] sm:$0xff]  ;;  %v491_v1 = vld [vmem:[%s1320_s2 + $0x78] sm:$0xff] }
  0x12   :  { %919 = vmatpush3.bf16.msra.mxu1 %v916_v51  ;;  %v936_v2 = vpack.c.bf16 %v491_v1, %v490_v0 }
  0x13   :  { %921 = vmatprep.subr.bf16.mxu1 %v920_v54 }
  0x14   :  { %781 = vmatmul.mubr.msk.f32.vlgmr.msra.gmra.mrb[0].mxu0 %vm50_vm0, %v16_v31 }
  0x15   :  { %175 = vmatprep.mubr.f32.mxu0 %v1013_v3 }
  0x16   :  { %923 = vmatpush3.bf16.msra.mxu1 %v920_v54 }
  0x17   :  { %925 = vmatprep.subr.bf16.mxu1 %v924_v57 }
  0x18   :  { %782 = vmatmul.mubr.msk.f32.gmra.mrb[2].mxu0 %vm50_vm0, %v17_v32 }
  0x19   :  { %181 = vmatprep.mubr.f32.mxu0 %v1013_v3 }
  0x1a   :  { %927 = vmatpush3.bf16.msra.mxu1 %v924_v57 }
  0x1b   :  { %929 = vmatprep.subr.bf16.mxu1 %v928_v60 }
  0x1c   :  { %783 = vmatmul.mubr.msk.f32.gmra.mrb[4].mxu0 %vm50_vm0, %v18_v33 }
  0x1d   :  { %187 = vmatprep.mubr.f32.mxu0 %v1013_v3 }
  0x1e   :  { %931 = vmatpush3.bf16.msra.mxu1 %v928_v60 }
  0x1f   :  { %933 = vmatprep.subr.bf16.mxu1 %v932_v63 }
  0x20   :  { %784 = vmatmul.mubr.msk.f32.gmra.mrb[6].mxu0 %vm50_vm0, %v19_v34 }
  0x21   :  { %193 = vmatprep.mubr.f32.mxu0 %v1013_v3 }
  0x22   :  { %935 = vmatpush3.bf16.msra.mxu1 %v932_v63 }
  0x23   :  { %937 = vmatprep.subr.bf16.mxu1 %v936_v2 }
  0x24   :  { %785 = vmatmul.mubr.msk.f32.gmra.mrb[8].mxu0 %vm50_vm0, %v20_v35 }
  0x25   :  { %199 = vmatprep.mubr.f32.mxu0 %v1013_v3 }
  0x26   :  { %939 = vmatpush3.bf16.msra.mxu1 %v936_v2 }
  0x28   :  { %786 = vmatmul.mubr.msk.f32.gmra.mrb[10].mxu0 %vm50_vm0, %v21_v36 }
  0x29   :  { %205 = vmatprep.mubr.f32.mxu0 %v1013_v3 }
  0x2c   :  { %787 = vmatmul.mubr.msk.f32.gmra.mrb[12].mxu0 %vm50_vm0, %v22_v37 }
  0x2d   :  { %211 = vmatprep.mubr.f32.mxu0 %v1013_v3 }
  0x30   :  { %788 = vmatmul.mubr.msk.f32.gmra.mrb[14].mxu0 %vm50_vm0, %v23_v38 }
  0x31   :  { %217 = vmatprep.mubr.f32.mxu0 %v1013_v3 }
  0x34   :  { %789 = vmatmul.mubr.msk.f32.gmra.mrb[16].mxu0 %vm50_vm0, %v24_v39 }
  0x35   :  { %223 = vmatprep.mubr.f32.mxu0 %v1013_v3 }
  0x38   :  { %790 = vmatmul.mubr.msk.f32.gmra.mrb[18].mxu0 %vm50_vm0, %v25_v40 }
  0x39   :  { %229 = vmatprep.mubr.f32.mxu0 %v1013_v3 }
  0x3c   :  { %791 = vmatmul.mubr.msk.f32.gmra.mrb[20].mxu0 %vm50_vm0, %v26_v41 }
  0x3d   :  { %235 = vmatprep.mubr.f32.mxu0 %v1013_v3 }
  0x40   :  { %792 = vmatmul.mubr.msk.f32.gmra.mrb[22].mxu0 %vm50_vm0, %v27_v42 }
  0x41   :  { %241 = vmatprep.mubr.f32.mxu0 %v1013_v3 }
  0x44   :  { %793 = vmatmul.mubr.msk.f32.gmra.mrb[24].mxu0 %vm50_vm0, %v28_v43 }
  0x45   :  { %247 = vmatprep.mubr.f32.mxu0 %v1013_v3 }
  0x48   :  { %794 = vmatmul.mubr.msk.f32.gmra.mrb[26].mxu0 %vm50_vm0, %v29_v44 }
  0x49   :  { %253 = vmatprep.mubr.f32.mxu0 %v1013_v3 }
  0x4c   :  { %795 = vmatmul.mubr.msk.f32.gmra.mrb[28].mxu0 %vm50_vm0, %v30_v45 }
  0x4d   :  { %259 = vmatprep.mubr.f32.mxu0 %v1013_v3 }
  0x50   :  { %796 = vmatmul.mubr.msk.f32.gmra.mrb[30].mxu0 %vm50_vm0, %v31_v46 }
  0x51   :  { %265 = vmatprep.mubr.f32.mxu0 %v1013_v3 }
  0x54   :  { %797 = vmatmul.mubr.msk.f32.gmra.mrb[32].mxu0 %vm50_vm0, %v32_v47 }
  0x55   :  { %271 = vmatprep.mubr.f32.mxu0 %v1013_v3 }
  0x58   :  { %798 = vmatmul.mubr.msk.f32.gmra.mrb[34].mxu0 %vm50_vm0, %v33_v48 }
  0xe7   :  { %v171_v3 = vpop.f32.mrb[0].mxu0 }
  0xe8   :  { %v278_v4 = vmul.f32 %v171_v3, %v171_v3  ;;  %v173_v5 = vpop.f32.mrb[1].mxu0 }
  0xe9   :  { %v296_v6 = vmul.f32 %v173_v5, %v173_v5 }
  0xeb   :  { %v314_v7 = vadd.f32 %v296_v6, %v278_v4  ;;  %v177_v8 = vpop.f32.mrb[2].mxu0 }
  0xec   :  { %v279_v9 = vmul.f32 %v177_v8, %v177_v8  ;;  %v179_v10 = vpop.f32.mrb[3].mxu0 }
  0xed   :  { %v332_v11 = vmax.f32 %v314_v7, 1e-30  ;;  %v297_v12 = vmul.f32 %v179_v10, %v179_v10 }
  0xef   :  { %v315_v13 = vadd.f32 %v297_v12, %v279_v9  ;;  %v183_v14 = vpop.f32.mrb[4].mxu0  ;;  %941 = vrsqrt.f32 %v332_v11  ;;  %vm352_vm1 = vcmp.eq.f32.partialorder %v332_v11, inf  ;;  %v355_v35 = vand.u32 2147483648, %v332_v11 }
  0xf0   :  { %v280_v15 = vmul.f32 %v183_v14, %v183_v14  ;;  %v185_v16 = vpop.f32.mrb[5].mxu0  ;;  %vm354_vm2 = vcmp.eq.f32.partialorder %v332_v11, 0.0 }
  0xf1   :  { %v333_v17 = vmax.f32 %v315_v13, 1e-30  ;;  %v298_v18 = vmul.f32 %v185_v16, %v185_v16 }
  0xf3   :  { %v316_v19 = vadd.f32 %v298_v18, %v280_v15  ;;  %v189_v20 = vpop.f32.mrb[6].mxu0  ;;  %943 = vrsqrt.f32 %v333_v17  ;;  %vm359_vm3 = vcmp.eq.f32.partialorder %v333_v17, inf  ;;  %v362_v46 = vand.u32 2147483648, %v333_v17 }
  0xf4   :  { %v281_v21 = vmul.f32 %v189_v20, %v189_v20  ;;  %v191_v22 = vpop.f32.mrb[7].mxu0  ;;  %vm361_vm4 = vcmp.eq.f32.partialorder %v333_v17, 0.0 }
  0xf5   :  { %v334_v23 = vmax.f32 %v316_v19, 1e-30  ;;  %v299_v24 = vmul.f32 %v191_v22, %v191_v22 }
  0xf7   :  { %v317_v25 = vadd.f32 %v299_v24, %v281_v21  ;;  %v195_v26 = vpop.f32.mrb[8].mxu0  ;;  %945 = vrsqrt.f32 %v334_v23  ;;  %vm366_vm5 = vcmp.eq.f32.partialorder %v334_v23, inf  ;;  %v369_v57 = vand.u32 2147483648, %v334_v23 }
  0xf8   :  { %v282_v27 = vmul.f32 %v195_v26, %v195_v26  ;;  %v197_v28 = vpop.f32.mrb[9].mxu0  ;;  %vm368_vm6 = vcmp.eq.f32.partialorder %v334_v23, 0.0 }
  0xf9   :  { %v942_v29 = vpop.eup %941  ;;  %v335_v30 = vmax.f32 %v317_v25, 1e-30  ;;  %v300_v31 = vmul.f32 %v197_v28, %v197_v28 }
  0xfa   :  { %v351_v32 = vmul.f32 %v942_v29, %v332_v11 }
  0xfb   :  { %v318_v33 = vadd.f32 %v300_v31, %v282_v27  ;;  %v201_v34 = vpop.f32.mrb[10].mxu0  ;;  %947 = vrsqrt.f32 %v335_v30  ;;  %vm373_vm7 = vcmp.eq.f32.partialorder %v335_v30, inf  ;;  %v376_v4 = vand.u32 2147483648, %v335_v30 }
  0xfc   :  { %v283_v36 = vmul.f32 %v201_v34, %v201_v34  ;;  %v203_v37 = vpop.f32.mrb[11].mxu0  ;;  %v353_v38 = vsel %vm352_vm1, %v332_v11, %v351_v32  ;;  %vm375_vm8 = vcmp.eq.f32.partialorder %v335_v30, 0.0 }
  0xfd   :  { %v944_v39 = vpop.eup %943  ;;  %v1225_v40 = vmax.f32 %v318_v33, 1e-30  ;;  %v301_v41 = vmul.f32 %v203_v37, %v203_v37  ;;  %v356_v42 = vsel %vm354_vm2, %v355_v35, %v353_v38 }
  0xfe   :  { %865 = vmatprep.mubr.f32.mxu1 %v356_v42  ;;  %v358_v43 = vmul.f32 %v944_v39, %v333_v17 }
  0xff   :  { %v319_v44 = vadd.f32 %v301_v41, %v283_v36  ;;  %v207_v45 = vpop.f32.mrb[12].mxu0  ;;  %949 = vrsqrt.f32 %v1225_v40  ;;  %vm380_vm9 = vcmp.eq.f32.partialorder %v1225_v40, inf  ;;  %v383_v15 = vand.u32 2147483648, %v1225_v40 }
 0x100   :  { %v284_v47 = vmul.f32 %v207_v45, %v207_v45  ;;  %v209_v48 = vpop.f32.mrb[13].mxu0  ;;  %v360_v49 = vsel %vm359_vm3, %v333_v17, %v358_v43  ;;  %vm382_vm10 = vcmp.eq.f32.partialorder %v1225_v40, 0.0 }
 0x101   :  { %v946_v50 = vpop.eup %945  ;;  %v1228_v51 = vmax.f32 %v319_v44, 1e-30  ;;  %v302_v52 = vmul.f32 %v209_v48, %v209_v48  ;;  %v363_v53 = vsel %vm361_vm4, %v362_v46, %v360_v49 }
 0x102   :  { %866 = vmatmul.mubr.f32.vlgmr.msra.gmra.mrb[0].mxu1 %v363_v53  ;;  %v365_v54 = vmul.f32 %v946_v50, %v334_v23 }
 0x103   :  { %v320_v55 = vadd.f32 %v302_v52, %v284_v47  ;;  %v213_v56 = vpop.f32.mrb[14].mxu0  ;;  %951 = vrsqrt.f32 %v1228_v51  ;;  %vm387_vm11 = vcmp.eq.f32.partialorder %v1228_v51, inf  ;;  %v390_v26 = vand.u32 2147483648, %v1228_v51 }
 0x104   :  { %v285_v58 = vmul.f32 %v213_v56, %v213_v56  ;;  %v215_v59 = vpop.f32.mrb[15].mxu0  ;;  %v367_v60 = vsel %vm366_vm5, %v334_v23, %v365_v54  ;;  %vm389_vm12 = vcmp.eq.f32.partialorder %v1228_v51, 0.0 }
 0x105   :  { %v948_v61 = vpop.eup %947  ;;  %v1231_v62 = vmax.f32 %v320_v55, 1e-30  ;;  %v303_v63 = vmul.f32 %v215_v59, %v215_v59  ;;  %v370_v0 = vsel %vm368_vm6, %v369_v57, %v367_v60 }
 0x106   :  { %868 = vmatprep.mubr.f32.mxu1 %v370_v0  ;;  %v372_v1 = vmul.f32 %v948_v61, %v335_v30 }
 0x107   :  { %v321_v2 = vadd.f32 %v303_v63, %v285_v58  ;;  %v219_v3 = vpop.f32.mrb[16].mxu0  ;;  %953 = vrsqrt.f32 %v1231_v62  ;;  %vm394_vm13 = vcmp.eq.f32.partialorder %v1231_v62, inf  ;;  %v397_v37 = vand.u32 2147483648, %v1231_v62 }
 0x108   :  { %v286_v5 = vmul.f32 %v219_v3, %v219_v3  ;;  %v221_v6 = vpop.f32.mrb[17].mxu0  ;;  %v374_v7 = vsel %vm373_vm7, %v335_v30, %v372_v1  ;;  %vm396_vm14 = vcmp.eq.f32.partialorder %v1231_v62, 0.0 }
 0x109   :  { %v950_v8 = vpop.eup %949  ;;  %v1234_v9 = vmax.f32 %v321_v2, 1e-30  ;;  %v304_v10 = vmul.f32 %v221_v6, %v221_v6  ;;  %v377_v11 = vsel %vm375_vm8, %v376_v4, %v374_v7 }
 0x10a   :  { %869 = vmatmul.mubr.f32.gmra.mrb[2].mxu1 %v377_v11  ;;  %v379_v12 = vmul.f32 %v950_v8, %v1225_v40 }
 0x10b   :  { %v322_v13 = vadd.f32 %v304_v10, %v286_v5  ;;  %v225_v14 = vpop.f32.mrb[18].mxu0  ;;  %955 = vrsqrt.f32 %v1234_v9  ;;  %vm401_vm15 = vcmp.eq.f32.partialorder %v1234_v9, inf  ;;  %v404_v48 = vand.u32 2147483648, %v1234_v9 }
 0x10c   :  { %v287_v16 = vmul.f32 %v225_v14, %v225_v14  ;;  %v227_v17 = vpop.f32.mrb[19].mxu0  ;;  %v381_v18 = vsel %vm380_vm9, %v1225_v40, %v379_v12  ;;  %vm403_vm0 = vcmp.eq.f32.partialorder %v1234_v9, 0.0 }
 0x10d   :  { %v952_v19 = vpop.eup %951  ;;  %v1242_v20 = vmax.f32 %v322_v13, 1e-30  ;;  %v305_v21 = vmul.f32 %v227_v17, %v227_v17  ;;  %v384_v22 = vsel %vm382_vm10, %v383_v15, %v381_v18 }
 0x10e   :  { %871 = vmatprep.mubr.f32.mxu1 %v384_v22  ;;  %v386_v23 = vmul.f32 %v952_v19, %v1228_v51 }
 0x10f   :  { %v323_v24 = vadd.f32 %v305_v21, %v287_v16  ;;  %v231_v25 = vpop.f32.mrb[20].mxu0  ;;  %957 = vrsqrt.f32 %v1242_v20  ;;  %vm408_vm1 = vcmp.eq.f32.partialorder %v1242_v20, inf  ;;  %v411_v59 = vand.u32 2147483648, %v1242_v20 }
 0x110   :  { %v288_v27 = vmul.f32 %v231_v25, %v231_v25  ;;  %v233_v28 = vpop.f32.mrb[21].mxu0  ;;  %v388_v29 = vsel %vm387_vm11, %v1228_v51, %v386_v23  ;;  %vm410_vm2 = vcmp.eq.f32.partialorder %v1242_v20, 0.0 }
 0x111   :  { %v954_v30 = vpop.eup %953  ;;  %v1250_v31 = vmax.f32 %v323_v24, 1e-30  ;;  %v306_v32 = vmul.f32 %v233_v28, %v233_v28  ;;  %v391_v33 = vsel %vm389_vm12, %v390_v26, %v388_v29 }
 0x112   :  { %872 = vmatmul.mubr.f32.gmra.mrb[4].mxu1 %v391_v33  ;;  %v393_v34 = vmul.f32 %v954_v30, %v1231_v62 }
 0x113   :  { %v324_v35 = vadd.f32 %v306_v32, %v288_v27  ;;  %v237_v36 = vpop.f32.mrb[22].mxu0  ;;  %959 = vrsqrt.f32 %v1250_v31  ;;  %vm415_vm3 = vcmp.eq.f32.partialorder %v1250_v31, inf  ;;  %v418_v6 = vand.u32 2147483648, %v1250_v31 }
 0x114   :  { %v289_v38 = vmul.f32 %v237_v36, %v237_v36  ;;  %v239_v39 = vpop.f32.mrb[23].mxu0  ;;  %v395_v40 = vsel %vm394_vm13, %v1231_v62, %v393_v34  ;;  %vm417_vm4 = vcmp.eq.f32.partialorder %v1250_v31, 0.0 }
 0x115   :  { %v956_v41 = vpop.eup %955  ;;  %v1258_v42 = vmax.f32 %v324_v35, 1e-30  ;;  %v307_v43 = vmul.f32 %v239_v39, %v239_v39  ;;  %v398_v44 = vsel %vm396_vm14, %v397_v37, %v395_v40 }
 0x116   :  { %874 = vmatprep.mubr.f32.mxu1 %v398_v44  ;;  %v400_v45 = vmul.f32 %v956_v41, %v1234_v9 }
 0x117   :  { %v325_v46 = vadd.f32 %v307_v43, %v289_v38  ;;  %v243_v47 = vpop.f32.mrb[24].mxu0  ;;  %961 = vrsqrt.f32 %v1258_v42  ;;  %vm422_vm5 = vcmp.eq.f32.partialorder %v1258_v42, inf  ;;  %v425_v17 = vand.u32 2147483648, %v1258_v42 }
 0x118   :  { %v290_v49 = vmul.f32 %v243_v47, %v243_v47  ;;  %v245_v50 = vpop.f32.mrb[25].mxu0  ;;  %v402_v51 = vsel %vm401_vm15, %v1234_v9, %v400_v45  ;;  %vm424_vm6 = vcmp.eq.f32.partialorder %v1258_v42, 0.0 }
 0x119   :  { %v958_v52 = vpop.eup %957  ;;  %v1266_v53 = vmax.f32 %v325_v46, 1e-30  ;;  %v308_v54 = vmul.f32 %v245_v50, %v245_v50  ;;  %v405_v55 = vsel %vm403_vm0, %v404_v48, %v402_v51 }
 0x11a   :  { %875 = vmatmul.mubr.f32.gmra.mrb[6].mxu1 %v405_v55  ;;  %v407_v56 = vmul.f32 %v958_v52, %v1242_v20 }
 0x11b   :  { %v326_v57 = vadd.f32 %v308_v54, %v290_v49  ;;  %v249_v58 = vpop.f32.mrb[26].mxu0  ;;  %963 = vrsqrt.f32 %v1266_v53  ;;  %vm429_vm7 = vcmp.eq.f32.partialorder %v1266_v53, inf  ;;  %v432_v28 = vand.u32 2147483648, %v1266_v53 }
 0x11c   :  { %v291_v60 = vmul.f32 %v249_v58, %v249_v58  ;;  %v251_v61 = vpop.f32.mrb[27].mxu0  ;;  %v409_v62 = vsel %vm408_vm1, %v1242_v20, %v407_v56  ;;  %vm431_vm8 = vcmp.eq.f32.partialorder %v1266_v53, 0.0 }
 0x11d   :  { %v960_v63 = vpop.eup %959  ;;  %v1274_v0 = vmax.f32 %v326_v57, 1e-30  ;;  %v309_v1 = vmul.f32 %v251_v61, %v251_v61  ;;  %v412_v2 = vsel %vm410_vm2, %v411_v59, %v409_v62 }
 0x11e   :  { %877 = vmatprep.mubr.f32.mxu1 %v412_v2  ;;  %v414_v3 = vmul.f32 %v960_v63, %v1250_v31 }
 0x11f   :  { %v327_v4 = vadd.f32 %v309_v1, %v291_v60  ;;  %v255_v5 = vpop.f32.mrb[28].mxu0  ;;  %965 = vrsqrt.f32 %v1274_v0  ;;  %vm436_vm9 = vcmp.eq.f32.partialorder %v1274_v0, inf  ;;  %v439_v39 = vand.u32 2147483648, %v1274_v0 }
 0x120   :  { %v292_v7 = vmul.f32 %v255_v5, %v255_v5  ;;  %v257_v8 = vpop.f32.mrb[29].mxu0  ;;  %v416_v9 = vsel %vm415_vm3, %v1250_v31, %v414_v3  ;;  %vm438_vm10 = vcmp.eq.f32.partialorder %v1274_v0, 0.0 }
 0x121   :  { %v962_v10 = vpop.eup %961  ;;  %v345_v11 = vmax.f32 %v327_v4, 1e-30  ;;  %v310_v12 = vmul.f32 %v257_v8, %v257_v8  ;;  %v419_v13 = vsel %vm417_vm4, %v418_v6, %v416_v9 }
 0x122   :  { %878 = vmatmul.mubr.f32.gmra.mrb[8].mxu1 %v419_v13  ;;  %v421_v14 = vmul.f32 %v962_v10, %v1258_v42 }
 0x123   :  { %v328_v15 = vadd.f32 %v310_v12, %v292_v7  ;;  %v261_v16 = vpop.f32.mrb[30].mxu0  ;;  %967 = vrsqrt.f32 %v345_v11  ;;  %vm443_vm11 = vcmp.eq.f32.partialorder %v345_v11, inf  ;;  %v446_v49 = vand.u32 2147483648, %v345_v11 }
 0x124   :  { %v293_v18 = vmul.f32 %v261_v16, %v261_v16  ;;  %v263_v19 = vpop.f32.mrb[31].mxu0  ;;  %v423_v20 = vsel %vm422_vm5, %v1258_v42, %v421_v14  ;;  %vm445_vm12 = vcmp.eq.f32.partialorder %v345_v11, 0.0 }
 0x125   :  { %v964_v21 = vpop.eup %963  ;;  %v346_v22 = vmax.f32 %v328_v15, 1e-30  ;;  %v311_v23 = vmul.f32 %v263_v19, %v263_v19  ;;  %v426_v24 = vsel %vm424_vm6, %v425_v17, %v423_v20 }
 0x126   :  { %880 = vmatprep.mubr.f32.mxu1 %v426_v24  ;;  %v428_v25 = vmul.f32 %v964_v21, %v1266_v53 }
 0x127   :  { %v329_v26 = vadd.f32 %v311_v23, %v293_v18  ;;  %v267_v27 = vpop.f32.mrb[32].mxu0  ;;  %969 = vrsqrt.f32 %v346_v22  ;;  %vm450_vm13 = vcmp.eq.f32.partialorder %v346_v22, inf  ;;  %v453_v55 = vand.u32 2147483648, %v346_v22 }
 0x128   :  { %v294_v29 = vmul.f32 %v267_v27, %v267_v27  ;;  %v269_v30 = vpop.f32.mrb[33].mxu0  ;;  %v430_v31 = vsel %vm429_vm7, %v1266_v53, %v428_v25  ;;  %vm452_vm14 = vcmp.eq.f32.partialorder %v346_v22, 0.0 }
 0x129   :  { %v966_v32 = vpop.eup %965  ;;  %v347_v33 = vmax.f32 %v329_v26, 1e-30  ;;  %v312_v34 = vmul.f32 %v269_v30, %v269_v30  ;;  %v433_v35 = vsel %vm431_vm8, %v432_v28, %v430_v31 }
 0x12a   :  { %881 = vmatmul.mubr.f32.gmra.mrb[10].mxu1 %v433_v35  ;;  %v435_v36 = vmul.f32 %v966_v32, %v1274_v0 }
 0x12b   :  { %v330_v37 = vadd.f32 %v312_v34, %v294_v29  ;;  %v273_v38 = vpop.f32.mrb[34].mxu0  ;;  %971 = vrsqrt.f32 %v347_v33  ;;  %vm457_vm15 = vcmp.eq.f32.partialorder %v347_v33, inf  ;;  %v460_v60 = vand.u32 2147483648, %v347_v33 }
 0x12c   :  { %v295_v40 = vmul.f32 %v273_v38, %v273_v38  ;;  %v275_v41 = vpop.f32.mrb[35].mxu0  ;;  %v437_v42 = vsel %vm436_vm9, %v1274_v0, %v435_v36  ;;  %vm459_vm0 = vcmp.eq.f32.partialorder %v347_v33, 0.0 }
 0x12d   :  { %v968_v43 = vpop.eup %967  ;;  %v348_v44 = vmax.f32 %v330_v37, 1e-30  ;;  %v313_v45 = vmul.f32 %v275_v41, %v275_v41  ;;  %v440_v46 = vsel %vm438_vm10, %v439_v39, %v437_v42 }
 0x12e   :  { %883 = vmatprep.mubr.f32.mxu1 %v440_v46  ;;  %v442_v47 = vmul.f32 %v968_v43, %v345_v11 }
 0x12f   :  { %v331_v48 = vadd.f32 %v313_v45, %v295_v40  ;;  %973 = vrsqrt.f32 %v348_v44  ;;  %vm464_vm1 = vcmp.eq.f32.partialorder %v348_v44, inf  ;;  %v467_v1 = vand.u32 2147483648, %v348_v44 }
 0x130   :  { %v444_v50 = vsel %vm443_vm11, %v345_v11, %v442_v47  ;;  %vm466_vm2 = vcmp.eq.f32.partialorder %v348_v44, 0.0 }
 0x131   :  { %v970_v51 = vpop.eup %969  ;;  %v349_v52 = vmax.f32 %v331_v48, 1e-30  ;;  %v447_v53 = vsel %vm445_vm12, %v446_v49, %v444_v50 }
 0x132   :  { %884 = vmatmul.mubr.f32.gmra.mrb[12].mxu1 %v447_v53  ;;  %v449_v54 = vmul.f32 %v970_v51, %v346_v22 }
 0x133   :  { %975 = vrsqrt.f32 %v349_v52  ;;  %vm471_vm3 = vcmp.eq.f32.partialorder %v349_v52, inf  ;;  %v474_v6 = vand.u32 2147483648, %v349_v52  ;;  %vm473_vm4 = vcmp.eq.f32.partialorder %v349_v52, 0.0 }
 0x134   :  { %v451_v56 = vsel %vm450_vm13, %v346_v22, %v449_v54 }
 0x135   :  { %v972_v57 = vpop.eup %971  ;;  %v454_v58 = vsel %vm452_vm14, %v453_v55, %v451_v56 }
 0x136   :  { %886 = vmatprep.mubr.f32.mxu1 %v454_v58  ;;  %v456_v59 = vmul.f32 %v972_v57, %v347_v33 }
 0x138   :  { %v458_v61 = vsel %vm457_vm15, %v347_v33, %v456_v59 }
 0x139   :  { %v974_v62 = vpop.eup %973  ;;  %v461_v63 = vsel %vm459_vm0, %v460_v60, %v458_v61 }
 0x13a   :  { %887 = vmatmul.mubr.f32.gmra.mrb[14].mxu1 %v461_v63  ;;  %v463_v0 = vmul.f32 %v974_v62, %v348_v44 }
 0x13c   :  { %v465_v2 = vsel %vm464_vm1, %v348_v44, %v463_v0 }
 0x13d   :  { %v976_v3 = vpop.eup %975  ;;  %v468_v4 = vsel %vm466_vm2, %v467_v1, %v465_v2 }
 0x13e   :  { %889 = vmatprep.mubr.f32.mxu1 %v468_v4  ;;  %v470_v5 = vmul.f32 %v976_v3, %v349_v52 }
 0x140   :  { %v472_v7 = vsel %vm471_vm3, %v349_v52, %v470_v5 }
 0x141   :  { %v475_v8 = vsel %vm473_vm4, %v474_v6, %v472_v7 }
 0x142   :  { %890 = vmatmul.mubr.f32.gmra.mrb[16].mxu1 %v475_v8 }
 0x1d5   :  { %v867_v9 = vpop.f32.mrb[0].mxu1 }
 0x1d6   :  { %v558_v10 = vpop.f32.mrb[1].mxu1  ;;  %v648_v22 = vmax.f32 %v867_v9, 1e-05 }
 0x1d7   :  { %v647_v17 = vmax.f32 %v558_v10, 1e-05 }
 0x1d9   :  { %977 = vlog2.f32 %v647_v17 }
 0x1dd   :  { %v870_v11 = vpop.f32.mrb[2].mxu1 }
 0x1de   :  { %v568_v12 = vpop.f32.mrb[3].mxu1  ;;  %v650_v26 = vmax.f32 %v870_v11, 1e-05 }
 0x1df   :  { %v649_v23 = vmax.f32 %v568_v12, 1e-05 }
 0x1e3   :  { %v978_v25 = vpop.eup %977 }
 0x1e4   :  { %v657_v33 = vmul.f32 0.6931472, %v978_v25 }
 0x1e5   :  { %v1297_v13 = vpop.f32.mrb[4].mxu1 }
 0x1e6   :  { %v578_v14 = vpop.f32.mrb[5].mxu1  ;;  %v674_v41 = vmul.f32 0.868589, %v657_v33  ;;  %v652_v55 = vmax.f32 %v1297_v13, 1e-05 }
 0x1e7   :  { %v651_v32 = vmax.f32 %v578_v14, 1e-05 }
 0x1ed   :  { %v1299_v15 = vpop.f32.mrb[6].mxu1 }
 0x1ee   :  { %v1301_v16 = vpop.f32.mrb[7].mxu1 }
 0x1ef   :  { %v653_v53 = vmax.f32 %v1301_v16, 1e-05 }
 0x1f5   :  { %v879_v18 = vpop.f32.mrb[8].mxu1 }
 0x1f6   :  { %v683_v19 = vmax.f32 %v879_v18, 1e-05  ;;  %v719_v20 = vsub.f32 %v558_v10, %v879_v18  ;;  %v1303_v21 = vpop.f32.mrb[9].mxu1 }
 0x1f7   :  { %v655_v17 = vmax.f32 %v1303_v21, 1e-05 }
 0x1f8   :  { %979 = vlog2.f32 %v683_v19  ;;  %v728_v34 = vand.u32 2147483647, %v719_v20  ;;  %v654_v20 = vmax.f32 %v1299_v15, 1e-05 }
 0x1f9   :  { %981 = vlog2.f32 %v648_v22 }
 0x1fa   :  { %983 = vlog2.f32 %v649_v23 }
 0x1fd   :  { %v882_v24 = vpop.f32.mrb[10].mxu1 }
 0x1fe   :  { %v685_v27 = vmax.f32 %v882_v24, 1e-05  ;;  %v721_v28 = vsub.f32 %v568_v12, %v882_v24  ;;  %v608_v29 = vpop.f32.mrb[11].mxu1 }
 0x1ff   :  { %v684_v30 = vmax.f32 %v608_v29, 1e-05  ;;  %v720_v31 = vsub.f32 %v867_v9, %v608_v29 }
 0x200   :  { %985 = vlog2.f32 %v685_v27  ;;  %v730_v38 = vand.u32 2147483647, %v721_v28 }
 0x201   :  { %987 = vlog2.f32 %v684_v30  ;;  %v729_v35 = vand.u32 2147483647, %v720_v31 }
 0x202   :  { %v980_v36 = vpop.eup %979  ;;  %989 = vlog2.f32 %v650_v26 }
 0x203   :  { %v693_v37 = vmul.f32 0.6931472, %v980_v36  ;;  %v755_v39 = vadd.f32 %v729_v35, %v728_v34  ;;  %991 = vlog2.f32 %v651_v32  ;;  %v982_v40 = vpop.eup %981 }
 0x204   :  { %v984_v45 = vpop.eup %983  ;;  %v659_v52 = vmul.f32 0.6931472, %v982_v40 }
 0x205   :  { %v710_v42 = vmul.f32 0.868589, %v693_v37  ;;  %v885_v43 = vpop.f32.mrb[12].mxu1  ;;  %v756_v44 = vadd.f32 %v755_v39, %v730_v38  ;;  %v661_v54 = vmul.f32 0.6931472, %v984_v45 }
 0x206   :  { %v687_v46 = vmax.f32 %v885_v43, 1e-05  ;;  %v723_v47 = vsub.f32 %v578_v14, %v885_v43  ;;  %v618_v48 = vpop.f32.mrb[13].mxu1  ;;  %v675_v63 = vmul.f32 0.868589, %v659_v52 }
 0x207   :  { %v737_v49 = vsub.f32 %v674_v41, %v710_v42  ;;  %v686_v50 = vmax.f32 %v618_v48, 1e-05  ;;  %v722_v51 = vsub.f32 %v870_v11, %v618_v48  ;;  %v676_v1 = vmul.f32 0.868589, %v661_v54 }
 0x208   :  { %993 = vlog2.f32 %v687_v46  ;;  %v732_v60 = vand.u32 2147483647, %v723_v47 }
 0x209   :  { %995 = vlog2.f32 %v686_v50  ;;  %v731_v56 = vand.u32 2147483647, %v722_v51  ;;  %v746_v24 = vand.u32 2147483647, %v737_v49 }
 0x20a   :  { %v986_v57 = vpop.eup %985  ;;  %997 = vlog2.f32 %v653_v53 }
 0x20b   :  { %v988_v58 = vpop.eup %987  ;;  %v697_v59 = vmul.f32 0.6931472, %v986_v57  ;;  %v757_v61 = vadd.f32 %v756_v44, %v731_v56  ;;  %999 = vlog2.f32 %v652_v55 }
 0x20c   :  { %v990_v62 = vpop.eup %989  ;;  %v695_v0 = vmul.f32 0.6931472, %v988_v58 }
 0x20d   :  { %v712_v2 = vmul.f32 0.868589, %v697_v59  ;;  %v888_v3 = vpop.f32.mrb[14].mxu1  ;;  %v758_v4 = vadd.f32 %v757_v61, %v732_v60  ;;  %v992_v5 = vpop.eup %991  ;;  %v663_v10 = vmul.f32 0.6931472, %v990_v62 }
 0x20e   :  { %v711_v6 = vmul.f32 0.868589, %v695_v0  ;;  %v689_v7 = vmax.f32 %v888_v3, 1e-05  ;;  %v725_v8 = vsub.f32 %v1301_v16, %v888_v3  ;;  %v628_v9 = vpop.f32.mrb[15].mxu1 }
 0x20f   :  { %v739_v11 = vsub.f32 %v676_v1, %v712_v2  ;;  %v688_v12 = vmax.f32 %v628_v9, 1e-05  ;;  %v724_v14 = vsub.f32 %v1297_v13, %v628_v9  ;;  %v665_v19 = vmul.f32 0.6931472, %v992_v5 }
 0x210   :  { %v738_v18 = vsub.f32 %v675_v63, %v711_v6  ;;  %1001 = vlog2.f32 %v689_v7  ;;  %v677_v16 = vmul.f32 0.868589, %v663_v10  ;;  %v734_v28 = vand.u32 2147483647, %v725_v8 }
 0x211   :  { %1003 = vlog2.f32 %v688_v12  ;;  %v733_v22 = vand.u32 2147483647, %v724_v14  ;;  %v748_v30 = vand.u32 2147483647, %v739_v11  ;;  %v678_v32 = vmul.f32 0.868589, %v665_v19 }
 0x212   :  { %v994_v23 = vpop.eup %993  ;;  %v747_v25 = vand.u32 2147483647, %v738_v18  ;;  %1005 = vlog2.f32 %v655_v17 }
 0x213   :  { %v996_v26 = vpop.eup %995  ;;  %v701_v27 = vmul.f32 0.6931472, %v994_v23  ;;  %v759_v29 = vadd.f32 %v758_v4, %v733_v22  ;;  %1007 = vlog2.f32 %v654_v20 }
 0x214   :  { %v764_v13 = vadd.f32 %v747_v25, %v746_v24  ;;  %v699_v31 = vmul.f32 0.6931472, %v996_v26  ;;  %v998_v36 = vpop.eup %997 }
 0x215   :  { %v714_v33 = vmul.f32 0.868589, %v701_v27  ;;  %v891_v34 = vpop.f32.mrb[16].mxu1  ;;  %v760_v35 = vadd.f32 %v759_v29, %v734_v28  ;;  %v1000_v42 = vpop.eup %999  ;;  %v669_v47 = vmul.f32 0.6931472, %v998_v36 }
 0x216   :  { %v713_v37 = vmul.f32 0.868589, %v699_v31  ;;  %v765_v38 = vadd.f32 %v764_v13, %v748_v30  ;;  %v691_v39 = vmax.f32 %v891_v34, 1e-05  ;;  %v727_v40 = vsub.f32 %v1303_v21, %v891_v34  ;;  %v638_v41 = vpop.f32.mrb[17].mxu1 }
 0x217   :  { %v741_v43 = vsub.f32 %v678_v32, %v714_v33  ;;  %v690_v44 = vmax.f32 %v638_v41, 1e-05  ;;  %v726_v45 = vsub.f32 %v1299_v15, %v638_v41  ;;  %v667_v50 = vmul.f32 0.6931472, %v1000_v42 }
 0x218   :  { %v740_v46 = vsub.f32 %v677_v16, %v713_v37  ;;  %1009 = vlog2.f32 %v691_v39  ;;  %v736_v54 = vand.u32 2147483647, %v727_v40  ;;  %v680_v58 = vmul.f32 0.868589, %v669_v47 }
 0x219   :  { %1011 = vlog2.f32 %v690_v44  ;;  %v735_v48 = vand.u32 2147483647, %v726_v45  ;;  %v750_v56 = vand.u32 2147483647, %v741_v43  ;;  %v679_v15 = vmul.f32 0.868589, %v667_v50 }
 0x21a   :  { %v1002_v49 = vpop.eup %1001  ;;  %v749_v51 = vand.u32 2147483647, %v740_v46 }
 0x21b   :  { %v1004_v52 = vpop.eup %1003  ;;  %v705_v53 = vmul.f32 0.6931472, %v1002_v49  ;;  %v761_v55 = vadd.f32 %v760_v35, %v735_v48 }
 0x21c   :  { %v766_v21 = vadd.f32 %v765_v38, %v749_v51  ;;  %v703_v57 = vmul.f32 0.6931472, %v1004_v52  ;;  %v1006_v61 = vpop.eup %1005 }
 0x21d   :  { %v716_v59 = vmul.f32 0.868589, %v705_v53  ;;  %v762_v60 = vadd.f32 %v761_v55, %v736_v54  ;;  %v1008_v0 = vpop.eup %1007  ;;  %v673_v3 = vmul.f32 0.6931472, %v1006_v61 }
 0x21e   :  { %v715_v62 = vmul.f32 0.868589, %v703_v57  ;;  %v767_v63 = vadd.f32 %v766_v21, %v750_v56  ;;  %v671_v5 = vmul.f32 0.6931472, %v1008_v0 }
 0x21f   :  { %v743_v1 = vsub.f32 %v680_v58, %v716_v59  ;;  %763 = vst [vmem:[%s1322_s3] sm:$0xff] %v762_v60  ;;  %v682_v12 = vmul.f32 0.868589, %v673_v3 }
 0x220   :  { %v742_v2 = vsub.f32 %v679_v15, %v715_v62  ;;  %v681_v17 = vmul.f32 0.868589, %v671_v5 }
 0x221   :  { %v752_v9 = vand.u32 2147483647, %v743_v1 }
 0x222   :  { %v1010_v4 = vpop.eup %1009  ;;  %v751_v6 = vand.u32 2147483647, %v742_v2 }
 0x223   :  { %v1012_v7 = vpop.eup %1011  ;;  %v709_v8 = vmul.f32 0.6931472, %v1010_v4 }
 0x224   :  { %v768_v10 = vadd.f32 %v767_v63, %v751_v6  ;;  %v707_v11 = vmul.f32 0.6931472, %v1012_v7 }
 0x225   :  { %v718_v14 = vmul.f32 0.868589, %v709_v8 }
 0x226   :  { %v717_v18 = vmul.f32 0.868589, %v707_v11  ;;  %v769_v19 = vadd.f32 %v768_v10, %v752_v9 }
 0x227   :  { %v745_v20 = vsub.f32 %v682_v12, %v718_v14 }
 0x228   :  { %v744_v22 = vsub.f32 %v681_v17, %v717_v18 }
 0x229   :  { %v754_v24 = vand.u32 2147483647, %v745_v20 }
 0x22a   :  { %v753_v23 = vand.u32 2147483647, %v744_v22 }
 0x22c   :  { %v770_v25 = vadd.f32 %v769_v19, %v753_v23 }
 0x22e   :  { %v771_v26 = vadd.f32 %v770_v25, %v754_v24 }
 0x230   :  { %772 = vst [vmem:[%s1323_s4] sm:$0xff] %v771_v26 }

</bundles_post_ra>
